<compile_context>
chip_gen: v5e
topology: v5e:2x2
jax: 0.10.0
libtpu: 0.0.40
codegen_flags: <defaults>
</compile_context>

<pallas_src>
import jax
import jax.numpy as jnp
from jax.experimental import pallas as pl
from jax.experimental.pallas import tpu as pltpu


def _vq_kernel(z_ref, e_ref, he_ref, zq_ref, idx_ref, loss_ref):
    z = z_ref[...]                      # (TN, D), input dtype (no forced cast)
    e = e_ref[...]                      # (K, D), input dtype
    tn = z.shape[0]
    k = e.shape[0]

    # Distance surrogate: argmin_k(|z|^2 + |e_k|^2 - 2 z.e_k) == argmin_k(0.5|e_k|^2 - z.e_k)
    cross = jnp.dot(z, e.T, preferred_element_type=jnp.float32)     # (TN, K)
    dist = he_ref[...] - cross                                      # (1,K) bcast - (TN,K)

    idx = jnp.argmin(dist, axis=1).astype(jnp.int32)                # (TN,)
    idx_ref[...] = idx[None, :]                                     # lane-dense (1, TN)

    # Gather codebook rows via one-hot matmul (MXU-friendly gather); one-hot is
    # built directly in the codebook dtype to avoid an extra (TN, K) cast.
    onehot = (jax.lax.broadcasted_iota(jnp.int32, (tn, k), 1)
              == idx[:, None]).astype(e.dtype)                      # (TN, K)
    z_q = jnp.dot(onehot, e, preferred_element_type=jnp.float32)    # (TN, D) f32
    zq_ref[...] = z_q.astype(zq_ref.dtype)

    # Per-tile, per-lane partial of the squared error (sublane reduce only;
    # cross-lane reduce + scaling happens once in the wrapper).
    diff = z_q - z.astype(jnp.float32)
    loss_ref[...] = jnp.sum(diff * diff, axis=0, keepdims=True)     # (1, D)


def codebook_forward(z_nchw, embedding, beta: float = 0.25, tn: int = 512):
    """VQ codebook forward.  z_nchw: (B, D, H, W), embedding: (K, D)."""
    B, C, H, W = z_nchw.shape
    K, D = embedding.shape
    assert C == D, "channel dim must equal latent_dim"

    # TODO(synk): if the producer can emit NHWC directly (or allow_input_fusion
    # is enabled for this pallas_call), this full HBM transpose pass disappears.
    z_nhwc = jnp.transpose(z_nchw, (0, 2, 3, 1))
    z_flat = z_nhwc.reshape(-1, D)            # (N, D)
    N = z_flat.shape[0]

    tn = min(tn, N)
    assert N % tn == 0, "N = B*H*W must be divisible by the row tile"
    assert tn % 128 == 0 or tn == N, "row tile must be lane-dense (multiple of 128)"
    n_tiles = N // tn
    assert n_tiles == 1 or D % 128 == 0, (
        "latent_dim must be a multiple of 128 for multi-tile grids")

    # Precompute 0.5*|e_k|^2 once (f32), shaped (1, K) so it broadcasts over rows.
    half_e_sq = (0.5 * jnp.sum(embedding.astype(jnp.float32) ** 2, axis=1)
                 ).reshape(1, K)

    # VMEM budget: resident codebook + double-buffered tiles + (TN, K) intermediates.
    zb = z_flat.dtype.itemsize
    eb = embedding.dtype.itemsize
    vmem_bytes = (
        2 * K * D * eb            # codebook (pipeline double-buffers it)
        + 2 * K * 4               # 0.5*|e|^2 row
        + 2 * tn * D * zb         # z input tile
        + 2 * tn * D * zb         # z_q output tile
        + 2 * tn * 4              # idx output tile
        + 2 * D * 4               # per-tile loss partial
        + 4 * tn * K * 4          # cross / dist / one-hot intermediates (f32)
    )
    vmem_limit = int(min(max(vmem_bytes + (4 << 20), 32 << 20), 64 << 20))

    zq_flat, idx_rows, loss_partials = pl.pallas_call(
        _vq_kernel,
        out_shape=(
            jax.ShapeDtypeStruct((N, D), z_flat.dtype),       # z_q (flattened)
            jax.ShapeDtypeStruct((1, N), jnp.int32),          # argmin indices (lane-dense)
            jax.ShapeDtypeStruct((1, n_tiles * D), jnp.float32),  # per-tile loss partials
        ),
        grid=(n_tiles,),
        in_specs=[
            pl.BlockSpec((tn, D), lambda i: (i, 0)),          # z tile
            pl.BlockSpec((K, D), lambda i: (0, 0)),           # full codebook (resident)
            pl.BlockSpec((1, K), lambda i: (0, 0)),           # 0.5*|e|^2 (resident)
        ],
        out_specs=(
            pl.BlockSpec((tn, D), lambda i: (i, 0)),
            pl.BlockSpec((1, tn), lambda i: (0, i)),
            pl.BlockSpec((1, D), lambda i: (0, i)),
        ),
        compiler_params=pltpu.CompilerParams(
            dimension_semantics=("parallel",),                # no carried state
            vmem_limit_bytes=vmem_limit),
    )(z_flat, embedding, half_e_sq)

    # Final loss reduction in JAX: (1 + beta) * sum((z_q - z)^2) / (N*D).
    loss = (1.0 + beta) * jnp.sum(loss_partials) / jnp.float32(N * D)

    # Straight-through: z + (z_q - z).detach() == z_q numerically.
    z_q = jnp.transpose(zq_flat.reshape(B, H, W, D), (0, 3, 1, 2))  # back to NCHW
    return z_q, idx_rows.reshape(-1), loss


def _reference_forward(z_nchw, embedding, beta=0.25):
    """Pure-JAX reference mirroring the PyTorch forward."""
    B, C, H, W = z_nchw.shape
    z = jnp.transpose(z_nchw, (0, 2, 3, 1))
    zf = z.reshape(-1, C)
    d = (jnp.sum(zf ** 2, axis=1, keepdims=True)
         + jnp.sum(embedding ** 2, axis=1)
         - 2.0 * zf @ embedding.T)
    idx = jnp.argmin(d, axis=1)
    z_q = embedding[idx].reshape(z.shape)
    loss = jnp.mean((z_q - z) ** 2) + beta * jnp.mean((z_q - z) ** 2)
    z_q = jnp.transpose(z_q, (0, 3, 1, 2))
    return z_q, idx, loss


if __name__ == "__main__":
    # Small shapes consistent with the module (configurable codebook size /
    # latent dim; spatial feature map input).  N = B*H*W = 512 -> 2 row tiles.
    B, H, W = 2, 16, 16
    num_codebook_vectors = 256
    latent_dim = 128
    beta = 0.25

    key = jax.random.PRNGKey(0)
    k_emb, k_z = jax.random.split(key)

    # Deterministic init matching nn.Embedding.weight.data.uniform_(-1/K, 1/K)
    embedding = jax.random.uniform(
        k_emb, (num_codebook_vectors, latent_dim), dtype=jnp.float32,
        minval=-1.0 / num_codebook_vectors, maxval=1.0 / num_codebook_vectors)

    z = jax.random.normal(k_z, (B, latent_dim, H, W), dtype=jnp.float32)

    z_q, indices, loss = codebook_forward(z, embedding, beta=beta, tn=256)
    jax.block_until_ready((z_q, indices, loss))

    # Sanity check against pure-JAX reference.
    zq_ref, idx_ref, loss_ref = _reference_forward(z, embedding, beta=beta)
    assert z_q.shape == (B, latent_dim, H, W)
    assert indices.shape == (B * H * W,)
    assert jnp.all(indices == idx_ref.astype(jnp.int32))
    assert jnp.allclose(z_q, zq_ref, atol=1e-5, rtol=1e-5)
    assert jnp.allclose(loss, loss_ref, atol=1e-6, rtol=1e-5)

    print("KERNEL_OK")
</pallas_src>

<mosaic_0001>
module attributes {stable_mosaic.version = 11 : i64} {
  func.func @_vq_kernel(%arg0: i32, %arg1: memref<256x128xf32, #tpu.memory_space<vmem>>, %arg2: memref<256x128xf32, #tpu.memory_space<vmem>>, %arg3: memref<1x256xf32, #tpu.memory_space<vmem>>, %arg4: memref<256x128xf32, #tpu.memory_space<vmem>>, %arg5: memref<1x256xi32, #tpu.memory_space<vmem>>, %arg6: memref<1x128xf32, #tpu.memory_space<vmem>>) attributes {dimension_semantics = [#tpu.dimension_semantics<parallel>], iteration_bounds = array<i64: 2>, scalar_prefetch = 0 : i64, scratch_operands = 0 : i64, tpu.core_type = #tpu.core_type<tc>, window_params = [{transform_indices = @transform_0, window_bounds = array<i64: 256, 128>}, {pipeline_mode = #tpu.pipeline_mode<synchronous>, transform_indices = @transform_1, window_bounds = array<i64: 256, 128>}, {pipeline_mode = #tpu.pipeline_mode<synchronous>, transform_indices = @transform_2, window_bounds = array<i64: 1, 256>}, {transform_indices = @transform_3, window_bounds = array<i64: 256, 128>}, {transform_indices = @transform_4, window_bounds = array<i64: 1, 256>}, {transform_indices = @transform_5, window_bounds = array<i64: 1, 128>}]} {
    %c0 = arith.constant 0 : index
    %c0_0 = arith.constant 0 : index
    %0 = vector.load %arg1[%c0, %c0_0] : memref<256x128xf32, #tpu.memory_space<vmem>>, vector<256x128xf32>
    %c0_1 = arith.constant 0 : index
    %c0_2 = arith.constant 0 : index
    %1 = vector.load %arg2[%c0_1, %c0_2] : memref<256x128xf32, #tpu.memory_space<vmem>>, vector<256x128xf32>
    %2 = tpu.transpose %1, [1, 0] : vector<256x128xf32> -> vector<128x256xf32>
    %cst = arith.constant dense<0.000000e+00> : vector<256x256xf32>
    %3 = tpu.matmul %0, %2, %cst {dimension_numbers = #tpu.dot_dimension_numbers<[1], [0], [0], [1], [0, 0, 1, 1], [], []>} : vector<256x128xf32>, vector<128x256xf32>, vector<256x256xf32> -> vector<256x256xf32>
    %c0_3 = arith.constant 0 : index
    %c0_4 = arith.constant 0 : index
    %4 = vector.load %arg3[%c0_3, %c0_4] : memref<1x256xf32, #tpu.memory_space<vmem>>, vector<1x256xf32>
    %5 = vector.broadcast %4 : vector<1x256xf32> to vector<256x256xf32>
    %6 = arith.subf %5, %3 : vector<256x256xf32>
    %7 = tpu.reduce_index %6 {axis = 1 : i32, kind = #tpu.reduction_kind<arg_min>} : vector<256x256xf32> -> vector<256xi32>
    %8 = vector.shape_cast %7 : vector<256xi32> to vector<1x256xi32>
    %c0_5 = arith.constant 0 : index
    %c0_6 = arith.constant 0 : index
    %9 = vector.load %arg5[%c0_5, %c0_6] : memref<1x256xi32, #tpu.memory_space<vmem>>, vector<1x256xi32>
    tpu.vector_store %arg5[%c0_5, %c0_6], %8 {strides = array<i32>} : memref<1x256xi32, #tpu.memory_space<vmem>>, vector<1x256xi32>,
    %10 = tpu.iota {dimensions = array<i32: 1>} : vector<256x256xi32>
    %11 = vector.shape_cast %7 : vector<256xi32> to vector<256x1xi32>
    %12 = vector.broadcast %11 : vector<256x1xi32> to vector<256x256xi32>
    %13 = arith.cmpi eq, %10, %12 : vector<256x256xi32>
    %14 = arith.extui %13 : vector<256x256xi1> to vector<256x256xi32>
    %15 = arith.sitofp %14 : vector<256x256xi32> to vector<256x256xf32>
    %cst_7 = arith.constant dense<0.000000e+00> : vector<256x128xf32>
    %16 = tpu.matmul %15, %1, %cst_7 {dimension_numbers = #tpu.dot_dimension_numbers<[1], [0], [0], [1], [0, 0, 1, 1], [], []>} : vector<256x256xf32>, vector<256x128xf32>, vector<256x128xf32> -> vector<256x128xf32>
    %c0_8 = arith.constant 0 : index
    %c0_9 = arith.constant 0 : index
    %17 = vector.load %arg4[%c0_8, %c0_9] : memref<256x128xf32, #tpu.memory_space<vmem>>, vector<256x128xf32>
    tpu.vector_store %arg4[%c0_8, %c0_9], %16 {strides = array<i32>} : memref<256x128xf32, #tpu.memory_space<vmem>>, vector<256x128xf32>,
    %18 = arith.subf %16, %0 : vector<256x128xf32>
    %19 = arith.mulf %18, %18 : vector<256x128xf32>
    %cst_10 = arith.constant dense<0.000000e+00> : vector<128xf32>
    %20 = vector.multi_reduction <add>, %19, %cst_10 [0] : vector<256x128xf32> to vector<128xf32>
    %21 = vector.shape_cast %20 : vector<128xf32> to vector<1x128xf32>
    %c0_11 = arith.constant 0 : index
    %c0_12 = arith.constant 0 : index
    %22 = vector.load %arg6[%c0_11, %c0_12] : memref<1x128xf32, #tpu.memory_space<vmem>>, vector<1x128xf32>
    tpu.vector_store %arg6[%c0_11, %c0_12], %21 {strides = array<i32>} : memref<1x128xf32, #tpu.memory_space<vmem>>, vector<1x128xf32>,
    return
  }
  func.func @transform_0(%arg0: i32) -> (i32, i32) {
    %c0_i32 = arith.constant 0 : i32
    %c0_i32_0 = arith.constant 0 : i32
    return %arg0, %c0_i32 : i32, i32
  }
  func.func @transform_1(%arg0: i32) -> (i32, i32) {
    %c0_i32 = arith.constant 0 : i32
    %c0_i32_0 = arith.constant 0 : i32
    %c0_i32_1 = arith.constant 0 : i32
    return %c0_i32, %c0_i32_0 : i32, i32
  }
  func.func @transform_2(%arg0: i32) -> (i32, i32) {
    %c0_i32 = arith.constant 0 : i32
    %c0_i32_0 = arith.constant 0 : i32
    %c0_i32_1 = arith.constant 0 : i32
    return %c0_i32, %c0_i32_0 : i32, i32
  }
  func.func @transform_3(%arg0: i32) -> (i32, i32) {
    %c0_i32 = arith.constant 0 : i32
    %c0_i32_0 = arith.constant 0 : i32
    return %arg0, %c0_i32 : i32, i32
  }
  func.func @transform_4(%arg0: i32) -> (i32, i32) {
    %c0_i32 = arith.constant 0 : i32
    %c0_i32_0 = arith.constant 0 : i32
    return %c0_i32, %arg0 : i32, i32
  }
  func.func @transform_5(%arg0: i32) -> (i32, i32) {
    %c0_i32 = arith.constant 0 : i32
    %c0_i32_0 = arith.constant 0 : i32
    return %c0_i32, %arg0 : i32, i32
  }
}

</mosaic_0001>

<bundles_post_ra>
// kernel: tpu_custom_call.1
= control target key start
LH: loop header
LB: loop body
LE: loop exit
PB: predicated region body
PF: predicated region fallthrough
CT: control target
= control target key end

     0   :  { %s4308_s0 = inlined_call_operand.hbm [shape: f32[512,128], index: 0, kind: input, shape index: {}]   ;;  %s4309_s1 = inlined_call_operand.hbm [shape: f32[256,128], index: 1, kind: input, shape index: {}]   ;;  %s4310_s2 = inlined_call_operand.hbm [shape: f32[1,256], index: 2, kind: input, shape index: {}]   ;;  %s4311_s3 = inlined_call_operand.hbm [shape: f32[512,128], index: 3, kind: output, shape index: {0}]   ;;  %s4312_s4 = inlined_call_operand.hbm [shape: s32[1,512], index: 4, kind: output, shape index: {1}]   ;;  %s4313_s5 = inlined_call_operand.hbm [shape: f32[1,256], index: 5, kind: output, shape index: {2}]  }
   0x1   :  { %4318 = sst [smem:[#allocation16_spill]] %s4308_s0 }
   0x2   :  { %4319 = sst [smem:[#allocation17_spill]] %s4309_s1 }
   0x3   :  { %11 = vsyncpa [#allocation3], 0 }
   0x4   :  { %13 = vsyncpa [#allocation3 + $0x1], 0 }
   0x5   :  { %14 = vsyncpa [#allocation6], 0 }
   0x6   :  { %15 = vsyncpa [#allocation4], 0 }
   0x7   :  { %17 = vsyncpa [#allocation4 + $0x1], 0 }
   0x8   :  { %18 = vsyncpa [#allocation10], 0 }
   0x9   :  { %20 = vsyncpa [#allocation10 + $0x1], 0  ;;  %s2977_s18 = smov 0   ;;  %s2979_s19 = smov 0  }
   0xa   :  { %s2981_s20 = smov 0   ;;  %s2983_s21 = smov 0  }
   0xb LB: > { %s2998_s22 = sadd.s32 4294967295, %s2937_s21   ;;  %s4314_s23 = sadd.s32 4294967294, %s2937_s21   ;;  %s2937_s21 = sphi %s2983_s21, %s4335_s21   ;;  %s2933_s20 = sphi %s2981_s20, %s4334_s20   ;;  %s2929_s19 = sphi %s2979_s19, %s4333_s19   ;;  %s2925_s18 = sphi %s2977_s18, %s4332_s18  }
   0xc   : > { %p46_p0 = scmp.ne.s32.totalorder %s2929_s19, %s2925_s18  ;;  %p47_p1 = scmp.eq.s32.totalorder %s2998_s22, 0 }
   0xd   : > { %p112_p2 = scmp.eq.s32.totalorder %s2998_s22, 1  ;;  %p118_p3 = scmp.eq.s32.totalorder %s4314_s23, 1 }
   0xe   : > { %p3009_p4 = por %p47_p1, %p46_p0  ;;  %p2417_p5 = scmp.ge.s32.totalorder %s2937_s21, 1 }
   0xf   : > { %p3014_p6 = por %p118_p3, %p46_p0  ;;  %p177_p7 = scmp.lt.s32.totalorder %s2937_s21, 3 }
  0x10   : > { %s4322_s1 = sld [smem:[#allocation17_spill]]  ;;  %s2939_s30 = smov [#allocation5]  }
  0x11   : > { %p3022_p8 = pnand %p2417_p5, %p177_p7  ;;  %s190_s6 = sshll.u32 %s2939_s30, 4  ;;  %s191_s6 = int_to_ptr.vmem [resolvable:$true] %s190_s6 }
  0x12   : > { %s203_s9 = sshll.u32 %s4310_s2, 4  ;;  %s4315_s10 = smov 128   ;;  %s204_s9 = int_to_ptr.hbm [resolvable:$true] %s203_s9 }
  0x13   : > { %p2583_p9 = pneg %p3022_p8  ;;  %s2941_s11 = smov 8  }
  0x14   : > { %s2942_s12 = smov [#allocation7]   ;;  %s3038_s14 = sadd.s32 1, %s2937_s21  }
  0x15   : > { %p2584_p10 = pnand %p2583_p9, %p47_p1  ;;  %s205_s13 = sshll.u32 %s2942_s12, 4  ;;  %s206_s13 = int_to_ptr.vmem [resolvable:$true] %s205_s13 }
  0x16   : > { %s188_s28 = sshll.u32 %s4322_s1, 4  ;;  %s33_s15 = sadd.s32 1, %s2933_s20  ;;  %s189_s28 = int_to_ptr.hbm [resolvable:$true] %s188_s28 }
  0x17   : > { %2586 = dma.hbm_to_vmem [thread:$0]  (!%p2584_p10), %s189_s28, 4096, %s191_s6, [#allocation6], %s4315_s10, %s4315_s10, %s2941_s11  }
  0x18   : > { %2589 = dma.hbm_to_vmem [thread:$0]  (!%p2584_p10), %s204_s9, 32, %s206_s13, [#allocation6]  }
  0x19   : > { %s30_s16 = ssub.s32 %s2937_s21, %s3038_s14  ;;  %p40_p12 = scmp.ne.s32.totalorder %s2933_s20, %s2929_s19 }
  0x1a   : > { %p31_p13 = scmp.eq.s32.totalorder %s30_s16, 0  ;;  %p41_p0 = scmp.eq.s32.totalorder %s2937_s21, 0 }
  0x1b   : > { %p3048_p3 = por %p112_p2, %p40_p12  ;;  %p2606_p5 = scmp.lt.s32.totalorder %s2937_s21, 2 }
  0x1c   : > { %s3054_s26 = scalar_select %p31_p13, %s2933_s20, %s33_s15  }
  0x1d   : > { %p42_p7 = por %p41_p0, %p40_p12  ;;  %s216_s27 = sand.u32 1, %s2933_s20  }
  0x1e   : > { %s2421_s28 = sshll.u32 %s216_s27, 8  ;;  %s2565_s30 = sshll.u32 %s2937_s21, 8 }
  0x1f   : > { %s4325_s0 = sld [smem:[#allocation16_spill]]  ;;  %s220_s9 = scalar_lea.vmem [#allocation2], %s2421_s28 }
  0x20   : > { %s228_s12 = sshll.u32 %s220_s9, 4  ;;  %p3061_p2 = pnand %p2606_p5, %p42_p7  ;;  %s229_s12 = int_to_ptr.vmem [resolvable:$true] %s228_s12 }
  0x21   : > { %s217_s15 = scalar_lea.sflag [#allocation3], %s216_s27 }
  0x22   : > { %p2781_p10 = pneg %p3061_p2 }
  0x25   : > { %s225_s8 = scalar_lea.hbm %s4325_s0, %s2565_s30  ;;  %s2784_s6 = scalar_lea.hbm %s4325_s0, 512 }
  0x26   : > { %s226_s13 = sshll.u32 %s225_s8, 4  ;;  %s227_s13 = int_to_ptr.hbm [resolvable:$true] %s226_s13 }
  0x27   : > { %s2777_s23 = sshra.s32 %s227_s13, 4  ;;  %s2778_s23 = int_to_ptr.hbm [resolvable:$true] %s2777_s23 }
  0x28   : > { %s2779_s10 = scalar_lea.hbm %s2778_s23, 256  ;;  %p2785_p0 = scmp.lt.s32.totalorder %s2778_s23, %s4325_s0 }
  0x29   : > { %p2780_p9 = scmp.ne.s32.totalorder %s2778_s23, %s2779_s10  ;;  %p2786_p5 = scmp.lt.s32.totalorder %s2784_s6, %s2779_s10 }
  0x2b   : > { %p2782_p12 = pnand %p2781_p10, %p2780_p9  ;;  %p2787_p7 = por %p2786_p5, %p2785_p0 }
  0x2d   : > { %p2783_p13 = pneg %p2782_p12 }
  0x2f   : > { %p2788_p11 = pnand %p2787_p7, %p2783_p13 }
  0x31   : > { %2791 = shalt.err (!%p2788_p11)
}
  0x32   : > { %s4327_s27 = smov 128   ;;  %240 = sbr.rel (%p3022_p8) target bundleno = 1327 (0x52f), region = 32 }
  0x33   : > { %2593 = dma.hbm_to_vmem [thread:$0]  (!%p3061_p2), %s227_s13, 4096, %s229_s12, %s217_s15, %s4327_s27, %s4327_s27, %s2941_s11  }
  0x34   : > { %s3081_s9 = sand.u32 (!%p3022_p8), 1, %s2929_s19  }
  0x35   : > { %s2425_s23 = sshll.u32 (!%p3022_p8), %s3081_s9, 8  ;;  %s243_s10 = scalar_lea.sflag (!%p3022_p8), [#allocation3], %s3081_s9 }
  0x36   : > { %s3087_s30 = scalar_lea.vmem (!%p3022_p8), [#allocation2], %s2425_s23 }
  0x37   : > { %2908 = dma.done.wait (%p3009_p4), %s243_s10, 4096  }
  0x38   : > { %2910 = vsyncadd (%p3009_p4), %s243_s10, 4294963200 }
  0x39   : > { %2912 = dma.done.wait (%p47_p1), [#allocation6], 4128  }
  0x3a   : > { %2914 = vsyncadd (%p47_p1), [#allocation6], 4294963168  ;;  %v343_v0 = vld [vmem:[#allocation5 + $0x78] sm:$0xff]  ;;  %v342_v2 = vld [vmem:[#allocation5 + $0x70] sm:$0xff]  ;;  %s3640_s24 = scalar_lea.vmem [#allocation8], %s2425_s23  ;;  %s2562_s29 = sshll.u32 %s2998_s22, 1 }
  0x3b   : > { %v359_v1 = vld [vmem:[#allocation5 + $0xf8] sm:$0xff]  ;;  %360 = vmatpush.xpose.msra.mxu0 %v343_v0  ;;  %v358_v3 = vld [vmem:[#allocation5 + $0xf0] sm:$0xff]  ;;  %1854 = vmatpush.msra.mxu2 %v343_v0  ;;  %v341_v4 = vld [vmem:[#allocation5 + $0x68] sm:$0xff]  ;;  %s2429_s11 = sshll.u32 %s3081_s9, 1  ;;  %s2251_s16 = scalar_lea.hbm %s4312_s4, %s2562_s29 }
  0x3c   : > { %473 = vmatpush.xpose.msra.mxu1 %v359_v1  ;;  %1967 = vmatpush.msra.mxu3 %v359_v1  ;;  %v357_v5 = vld [vmem:[#allocation5 + $0xe8] sm:$0xff]  ;;  %v340_v6 = vld [vmem:[#allocation5 + $0x60] sm:$0xff]  ;;  %v339_v8 = vld [vmem:[#allocation5 + $0x58] sm:$0xff]  ;;  %s2219_s15 = sand.u32 1, %s2998_s22   ;;  %s2566_s28 = sshll.u32 %s2998_s22, 8 }
  0x3d   : > { %1855 = vmatpush.msra.mxu2 %v342_v2  ;;  %v356_v7 = vld [vmem:[#allocation5 + $0xe0] sm:$0xff]  ;;  %v355_v9 = vld [vmem:[#allocation5 + $0xd8] sm:$0xff]  ;;  %v338_v10 = vld [vmem:[#allocation5 + $0x50] sm:$0xff]  ;;  %s286_s6 = scalar_lea.vmem [#allocation9], %s2429_s11  ;;  %s2255_s8 = sshll.u32 %s2251_s16, 4  ;;  %s2256_s8 = int_to_ptr.hbm [resolvable:$true] %s2255_s8 }
  0x3e   : > { %1968 = vmatpush.msra.mxu3 %v358_v3  ;;  %v354_v11 = vld [vmem:[#allocation5 + $0xd0] sm:$0xff]  ;;  %v337_v12 = vld [vmem:[#allocation5 + $0x48] sm:$0xff]  ;;  %v336_v14 = vld [vmem:[#allocation5 + $0x40] sm:$0xff]  ;;  %s2253_s7 = sshll.u32 %s286_s6, 4  ;;  %s2235_s10 = scalar_lea.hbm %s4311_s3, %s2566_s28  ;;  %s2254_s7 = int_to_ptr.vmem [resolvable:$true] %s2253_s7 }
  0x3f   : > { %361 = vmatpush.xpose.msra.mxu0 %v342_v2  ;;  %1856 = vmatpush.msra.mxu2 %v341_v4  ;;  %v353_v13 = vld [vmem:[#allocation5 + $0xc8] sm:$0xff]  ;;  %v352_v15 = vld [vmem:[#allocation5 + $0xc0] sm:$0xff]  ;;  %v335_v16 = vld [vmem:[#allocation5 + $0x38] sm:$0xff]  ;;  %s2236_s29 = sshll.u32 %s3640_s24, 4  ;;  %s2238_s11 = sshll.u32 %s2235_s10, 4  ;;  %s2237_s29 = int_to_ptr.vmem [resolvable:$true] %s2236_s29  ;;  %s2239_s11 = int_to_ptr.hbm [resolvable:$true] %s2238_s11 }
  0x40   : > { %474 = vmatpush.xpose.msra.mxu1 %v358_v3  ;;  %1969 = vmatpush.msra.mxu3 %v357_v5  ;;  %v351_v17 = vld [vmem:[#allocation5 + $0xb8] sm:$0xff]  ;;  %v334_v18 = vld [vmem:[#allocation5 + $0x30] sm:$0xff]  ;;  %v333_v20 = vld [vmem:[#allocation5 + $0x28] sm:$0xff]  ;;  %s4245_s12 = scalar_lea.sflag [#allocation10], %s2219_s15  ;;  %s2821_s13 = sshra.s32 %s2256_s8, 4  ;;  %s2822_s13 = int_to_ptr.hbm [resolvable:$true] %s2821_s13 }
  0x41   : > { %1857 = vmatpush.msra.mxu2 %v340_v6  ;;  %v350_v19 = vld [vmem:[#allocation5 + $0xb0] sm:$0xff]  ;;  %v349_v21 = vld [vmem:[#allocation5 + $0xa8] sm:$0xff]  ;;  %v332_v22 = vld [vmem:[#allocation5 + $0x20] sm:$0xff]  ;;  %s2823_s16 = scalar_lea.hbm %s2822_s13, 2  ;;  %s2827_s23 = scalar_lea.hbm %s4312_s4, 4 }
  0x42   : > { %1970 = vmatpush.msra.mxu3 %v356_v7  ;;  %v348_v23 = vld [vmem:[#allocation5 + $0xa0] sm:$0xff]  ;;  %v331_v24 = vld [vmem:[#allocation5 + $0x18] sm:$0xff]  ;;  %v330_v26 = vld [vmem:[#allocation5 + $0x10] sm:$0xff]  ;;  %p2824_p1 = scmp.ne.s32.totalorder %s2822_s13, %s2823_s16  ;;  %p2828_p11 = scmp.lt.s32.totalorder %s2822_s13, %s4312_s4 }
  0x43   : > { %362 = vmatpush.xpose.msra.mxu0 %v341_v4  ;;  %1858 = vmatpush.msra.mxu2 %v339_v8  ;;  %v347_v25 = vld [vmem:[#allocation5 + $0x98] sm:$0xff]  ;;  %v346_v27 = vld [vmem:[#allocation5 + $0x90] sm:$0xff]  ;;  %v329_v28 = vld [vmem:[#allocation5 + $0x8] sm:$0xff]  ;;  %p2829_p2 = scmp.lt.s32.totalorder %s2827_s23, %s2823_s16 }
  0x44   : > { %475 = vmatpush.xpose.msra.mxu1 %v357_v5  ;;  %1971 = vmatpush.msra.mxu3 %v355_v9  ;;  %v345_v29 = vld [vmem:[#allocation5 + $0x88] sm:$0xff]  ;;  %v328_v30 = vld [vmem:[#allocation5] sm:$0xff]  ;;  %v298_v34 = vld [vmem:[%s3087_s30 + $0x10] sm:$0xff]  ;;  %p2825_p4 = pnand %p2824_p1, %p3048_p3 }
  0x45   : > { %1859 = vmatpush.msra.mxu2 %v338_v10  ;;  %v344_v31 = vld [vmem:[#allocation5 + $0x80] sm:$0xff]  ;;  %v297_v33 = vld [vmem:[%s3087_s30 + $0x8] sm:$0xff]  ;;  %v299_v35 = vld [vmem:[%s3087_s30 + $0x18] sm:$0xff]  ;;  %p2830_p9 = por %p2829_p2, %p2828_p11 }
  0x46   : > { %1972 = vmatpush.msra.mxu3 %v354_v11  ;;  %v296_v32 = vld [vmem:[%s3087_s30] sm:$0xff]  ;;  %v301_v37 = vld [vmem:[%s3087_s30 + $0x28] sm:$0xff]  ;;  %v302_v38 = vld [vmem:[%s3087_s30 + $0x30] sm:$0xff]  ;;  %p2826_p8 = pneg %p2825_p4 }
  0x47   : > { %363 = vmatpush.xpose.msra.mxu0 %v340_v6  ;;  %1860 = vmatpush.msra.mxu2 %v337_v12  ;;  %v300_v36 = vld [vmem:[%s3087_s30 + $0x20] sm:$0xff]  ;;  %v303_v39 = vld [vmem:[%s3087_s30 + $0x38] sm:$0xff]  ;;  %v305_v41 = vld [vmem:[%s3087_s30 + $0x48] sm:$0xff] }
  0x48   : > { %476 = vmatpush.xpose.msra.mxu1 %v356_v7  ;;  %1973 = vmatpush.msra.mxu3 %v353_v13  ;;  %v304_v40 = vld [vmem:[%s3087_s30 + $0x40] sm:$0xff]  ;;  %v306_v42 = vld [vmem:[%s3087_s30 + $0x50] sm:$0xff]  ;;  %v307_v43 = vld [vmem:[%s3087_s30 + $0x58] sm:$0xff]  ;;  %p2831_p10 = pnand %p2830_p9, %p2826_p8 }
  0x49   : > { %1861 = vmatpush.msra.mxu2 %v336_v14  ;;  %v308_v44 = vld [vmem:[%s3087_s30 + $0x60] sm:$0xff]  ;;  %v309_v45 = vld [vmem:[%s3087_s30 + $0x68] sm:$0xff]  ;;  %v310_v46 = vld [vmem:[%s3087_s30 + $0x70] sm:$0xff] }
  0x4a   : > { %1974 = vmatpush.msra.mxu3 %v352_v15  ;;  %v311_v47 = vld [vmem:[%s3087_s30 + $0x78] sm:$0xff]  ;;  %v586_v48 = vld [vmem:[#allocation7] sm:$0x3]  ;;  %v313_v59 = vld [vmem:[%s3087_s30 + $0x88] sm:$0xff] }
  0x4b   : > { %364 = vmatpush.xpose.msra.mxu0 %v339_v8  ;;  %1862 = vmatpush.msra.mxu2 %v335_v16  ;;  %v3113_v49 = vperm.slane %v586_v48, 0  ;;  %v3115_v50 = vperm.slane %v586_v48, 1  ;;  %v312_v53 = vld [vmem:[%s3087_s30 + $0x80] sm:$0xff]  ;;  %v314_v1 = vld [vmem:[%s3087_s30 + $0x90] sm:$0xff]  ;;  %v315_v7 = vld [vmem:[%s3087_s30 + $0x98] sm:$0xff] }
  0x4c   : > { %477 = vmatpush.xpose.msra.mxu1 %v355_v9  ;;  %1975 = vmatpush.msra.mxu3 %v351_v17 }
  0x4d   : > { %1863 = vmatpush.msra.mxu2 %v334_v18 }
  0x4e   : > { %1976 = vmatpush.msra.mxu3 %v350_v19 }
  0x4f   : > { %365 = vmatpush.xpose.msra.mxu0 %v338_v10  ;;  %1864 = vmatpush.msra.mxu2 %v333_v20 }
  0x50   : > { %478 = vmatpush.xpose.msra.mxu1 %v354_v11  ;;  %1977 = vmatpush.msra.mxu3 %v349_v21 }
  0x51   : > { %1865 = vmatpush.msra.mxu2 %v332_v22 }
  0x52   : > { %1978 = vmatpush.msra.mxu3 %v348_v23 }
  0x53   : > { %366 = vmatpush.xpose.msra.mxu0 %v337_v12  ;;  %1866 = vmatpush.msra.mxu2 %v331_v24 }
  0x54   : > { %479 = vmatpush.xpose.msra.mxu1 %v353_v13  ;;  %1979 = vmatpush.msra.mxu3 %v347_v25  ;;  %v316_v13 = vld [vmem:[%s3087_s30 + $0xa0] sm:$0xff] }
  0x55   : > { %1867 = vmatpush.msra.mxu2 %v330_v26 }
  0x56   : > { %1980 = vmatpush.msra.mxu3 %v346_v27 }
  0x57   : > { %367 = vmatpush.xpose.msra.mxu0 %v336_v14  ;;  %1868 = vmatpush.msra.mxu2 %v329_v28 }
  0x58   : > { %480 = vmatpush.xpose.msra.mxu1 %v352_v15  ;;  %1981 = vmatpush.msra.mxu3 %v345_v29 }
  0x59   : > { %1869 = vmatpush.msra.mxu2 %v328_v30 }
  0x5a   : > { %1982 = vmatpush.msra.mxu3 %v344_v31 }
  0x5b   : > { %368 = vmatpush.xpose.msra.mxu0 %v335_v16 }
  0x5c   : > { %481 = vmatpush.xpose.msra.mxu1 %v351_v17 }
  0x5f   : > { %369 = vmatpush.xpose.msra.mxu0 %v334_v18 }
  0x60   : > { %482 = vmatpush.xpose.msra.mxu1 %v350_v19  ;;  %v317_v19 = vld [vmem:[%s3087_s30 + $0xa8] sm:$0xff] }
  0x63   : > { %370 = vmatpush.xpose.msra.mxu0 %v333_v20 }
  0x64   : > { %483 = vmatpush.xpose.msra.mxu1 %v349_v21 }
  0x67   : > { %371 = vmatpush.xpose.msra.mxu0 %v332_v22 }
  0x68   : > { %484 = vmatpush.xpose.msra.mxu1 %v348_v23 }
  0x6b   : > { %372 = vmatpush.xpose.msra.mxu0 %v331_v24 }
  0x6c   : > { %485 = vmatpush.xpose.msra.mxu1 %v347_v25  ;;  %v318_v25 = vld [vmem:[%s3087_s30 + $0xb0] sm:$0xff] }
  0x6f   : > { %373 = vmatpush.xpose.msra.mxu0 %v330_v26 }
  0x70   : > { %486 = vmatpush.xpose.msra.mxu1 %v346_v27 }
  0x73   : > { %374 = vmatpush.xpose.msra.mxu0 %v329_v28 }
  0x74   : > { %487 = vmatpush.xpose.msra.mxu1 %v345_v29 }
  0x77   : > { %375 = vmatpush.xpose.msra.mxu0 %v328_v30 }
  0x78   : > { %488 = vmatpush.xpose.msra.mxu1 %v344_v31 }
  0x7a   : > { %376 = vmatmul.f32.vlgmr.msra.gmra.mxu0 %v296_v32 }
  0x7b   : > { %489 = vmatmul.f32.vlgmr.msra.gmra.mxu1 %v296_v32 }
  0x82   : > { %379 = vmatmul.f32.gmra.mxu0 %v297_v33 }
  0x83   : > { %492 = vmatmul.f32.gmra.mxu1 %v297_v33 }
  0x8a   : > { %382 = vmatmul.f32.gmra.mxu0 %v298_v34 }
  0x8b   : > { %495 = vmatmul.f32.gmra.mxu1 %v298_v34 }
  0x92   : > { %385 = vmatmul.f32.gmra.mxu0 %v299_v35 }
  0x93   : > { %498 = vmatmul.f32.gmra.mxu1 %v299_v35 }
  0x9a   : > { %388 = vmatmul.f32.gmra.mxu0 %v300_v36 }
  0x9b   : > { %501 = vmatmul.f32.gmra.mxu1 %v300_v36 }
  0xa2   : > { %391 = vmatmul.f32.gmra.mxu0 %v301_v37 }
  0xa3   : > { %504 = vmatmul.f32.gmra.mxu1 %v301_v37 }
  0xaa   : > { %394 = vmatmul.f32.gmra.mxu0 %v302_v38 }
  0xab   : > { %507 = vmatmul.f32.gmra.mxu1 %v302_v38 }
  0xb2   : > { %397 = vmatmul.f32.gmra.mxu0 %v303_v39 }
  0xb3   : > { %510 = vmatmul.f32.gmra.mxu1 %v303_v39 }
  0xba   : > { %400 = vmatmul.f32.gmra.mxu0 %v304_v40 }
  0xbb   : > { %513 = vmatmul.f32.gmra.mxu1 %v304_v40 }
  0xc2   : > { %403 = vmatmul.f32.gmra.mxu0 %v305_v41 }
  0xc3   : > { %516 = vmatmul.f32.gmra.mxu1 %v305_v41 }
  0xca   : > { %406 = vmatmul.f32.gmra.mxu0 %v306_v42 }
  0xcb   : > { %519 = vmatmul.f32.gmra.mxu1 %v306_v42 }
  0xd2   : > { %409 = vmatmul.f32.gmra.mxu0 %v307_v43 }
  0xd3   : > { %522 = vmatmul.f32.gmra.mxu1 %v307_v43 }
  0xda   : > { %412 = vmatmul.f32.gmra.mxu0 %v308_v44 }
  0xdb   : > { %525 = vmatmul.f32.gmra.mxu1 %v308_v44 }
  0xe2   : > { %415 = vmatmul.f32.gmra.mxu0 %v309_v45 }
  0xe3   : > { %528 = vmatmul.f32.gmra.mxu1 %v309_v45 }
  0xea   : > { %418 = vmatmul.f32.gmra.mxu0 %v310_v46 }
  0xeb   : > { %531 = vmatmul.f32.gmra.mxu1 %v310_v46 }
  0xf2   : > { %421 = vmatmul.f32.gmra.mxu0 %v311_v47 }
  0xf3   : > { %534 = vmatmul.f32.gmra.mxu1 %v311_v47 }
  0xf7   : > { %v377_v51 = vpop.f32.mrf.mxu0 }
  0xf8   : > { %v490_v52 = vpop.f32.mrf.mxu1  ;;  %v3119_v54 = vsub.f32 %v3113_v49, %v377_v51 }
  0xf9   : > { %v3122_v55 = vsub.f32 %v3115_v50, %v490_v52 }
  0xfa   : > { %424 = vmatmul.f32.gmra.mxu0 %v312_v53 }
  0xfb   : > { %537 = vmatmul.f32.gmra.mxu1 %v312_v53  ;;  %vm659_vm0 = vcmp.le.f32.partialorder %v3119_v54, %v3122_v55 }
  0xfc   : > { %v660_v56 = vsel %vm659_vm0, %v3119_v54, %v3122_v55 }
  0xfd   : > { %662 = vmin.index.xlane.f32.xlu0 %v660_v56 }
  0xff   : > { %v380_v57 = vpop.f32.mrf.mxu0 }
 0x100   : > { %v493_v58 = vpop.f32.mrf.mxu1  ;;  %v3133_v60 = vsub.f32 %v3113_v49, %v380_v57 }
 0x101   : > { %v3136_v61 = vsub.f32 %v3115_v50, %v493_v58 }
 0x102   : > { %427 = vmatmul.f32.gmra.mxu0 %v313_v59 }
 0x103   : > { %vm667_vm1 = vcmp.le.f32.partialorder %v3133_v60, %v3136_v61  ;;  %540 = vmatmul.f32.gmra.mxu1 %v313_v59 }
 0x104   : > { %v668_v62 = vsel %vm667_vm1, %v3133_v60, %v3136_v61 }
 0x105   : > { %670 = vmin.index.xlane.f32.xlu1 %v668_v62 }
 0x107   : > { %v383_v63 = vpop.f32.mrf.mxu0 }
 0x108   : > { %v496_v0 = vpop.f32.mrf.mxu1  ;;  %v3147_v2 = vsub.f32 %v3113_v49, %v383_v63 }
 0x109   : > { %v3150_v3 = vsub.f32 %v3115_v50, %v496_v0 }
 0x10a   : > { %430 = vmatmul.f32.gmra.mxu0 %v314_v1 }
 0x10b   : > { %vm675_vm2 = vcmp.le.f32.partialorder %v3147_v2, %v3150_v3  ;;  %543 = vmatmul.f32.gmra.mxu1 %v314_v1 }
 0x10c   : > { %v676_v4 = vsel %vm675_vm2, %v3147_v2, %v3150_v3 }
 0x10d   : > { %678 = vmin.index.xlane.f32.xlu2 %v676_v4 }
 0x10f   : > { %v386_v5 = vpop.f32.mrf.mxu0 }
 0x110   : > { %v499_v6 = vpop.f32.mrf.mxu1  ;;  %v3161_v8 = vsub.f32 %v3113_v49, %v386_v5 }
 0x111   : > { %v3164_v9 = vsub.f32 %v3115_v50, %v499_v6 }
 0x112   : > { %433 = vmatmul.f32.gmra.mxu0 %v315_v7 }
 0x113   : > { %vm683_vm3 = vcmp.le.f32.partialorder %v3161_v8, %v3164_v9  ;;  %546 = vmatmul.f32.gmra.mxu1 %v315_v7 }
 0x114   : > { %v684_v10 = vsel %vm683_vm3, %v3161_v8, %v3164_v9 }
 0x115   : > { %686 = vmin.index.xlane.f32.xlu2 %v684_v10 }
 0x117   : > { %v389_v11 = vpop.f32.mrf.mxu0 }
 0x118   : > { %v502_v12 = vpop.f32.mrf.mxu1  ;;  %v3175_v14 = vsub.f32 %v3113_v49, %v389_v11 }
 0x119   : > { %v3178_v15 = vsub.f32 %v3115_v50, %v502_v12 }
 0x11a   : > { %436 = vmatmul.f32.gmra.mxu0 %v316_v13 }
 0x11b   : > { %vm691_vm4 = vcmp.le.f32.partialorder %v3175_v14, %v3178_v15  ;;  %549 = vmatmul.f32.gmra.mxu1 %v316_v13 }
 0x11c   : > { %v692_v16 = vsel %vm691_vm4, %v3175_v14, %v3178_v15 }
 0x11d   : > { %694 = vmin.index.xlane.f32.xlu1 %v692_v16 }
 0x11f   : > { %v392_v17 = vpop.f32.mrf.mxu0 }
 0x120   : > { %v505_v18 = vpop.f32.mrf.mxu1  ;;  %v3189_v20 = vsub.f32 %v3113_v49, %v392_v17  ;;  %v656_v17 = vlaneseq }
 0x121   : > { %v3192_v21 = vsub.f32 %v3115_v50, %v505_v18  ;;  %v319_v18 = vld [vmem:[%s3087_s30 + $0xb8] sm:$0xff] }
 0x122   : > { %439 = vmatmul.f32.gmra.mxu0 %v317_v19 }
 0x123   : > { %vm699_vm5 = vcmp.le.f32.partialorder %v3189_v20, %v3192_v21  ;;  %552 = vmatmul.f32.gmra.mxu1 %v317_v19 }
 0x124   : > { %v700_v22 = vsel %vm699_vm5, %v3189_v20, %v3192_v21 }
 0x125   : > { %702 = vmin.index.xlane.f32.xlu0 %v700_v22 }
 0x127   : > { %v395_v23 = vpop.f32.mrf.mxu0 }
 0x128   : > { %v508_v24 = vpop.f32.mrf.mxu1  ;;  %v3203_v26 = vsub.f32 %v3113_v49, %v395_v23  ;;  %v3321_v23 = vand.u32 127, %v656_v17 }
 0x129   : > { %v3206_v27 = vsub.f32 %v3115_v50, %v508_v24 }
 0x12a   : > { %442 = vmatmul.f32.gmra.mxu0 %v318_v25 }
 0x12b   : > { %vm707_vm6 = vcmp.le.f32.partialorder %v3203_v26, %v3206_v27  ;;  %555 = vmatmul.f32.gmra.mxu1 %v318_v25 }
 0x12c   : > { %v708_v28 = vsel %vm707_vm6, %v3203_v26, %v3206_v27  ;;  %v2943_v26 = vmov 1.0  }
 0x12d   : > { %710 = vmin.index.xlane.f32.xlu1 %v708_v28 }
 0x12f   : > { %v398_v29 = vpop.f32.mrf.mxu0 }
 0x130   : > { %v511_v30 = vpop.f32.mrf.mxu1  ;;  %v3216_v31 = vsub.f32 %v3113_v49, %v398_v29  ;;  %v3332_v29 = vadd.s32 128, %v3321_v23 }
 0x131   : > { %v3219_v32 = vsub.f32 %v3115_v50, %v511_v30 }
 0x132   : > { %445 = vmatmul.f32.gmra.mxu0 %v319_v18  ;;  %v701_v60 = vsel %vm699_vm5, %v3321_v23, %v3332_v29 }
 0x133   : > { %vm715_vm7 = vcmp.le.f32.partialorder %v3216_v31, %v3219_v32  ;;  %558 = vmatmul.f32.gmra.mxu1 %v319_v18 }
 0x134   : > { %v716_v33 = vsel %vm715_vm7, %v3216_v31, %v3219_v32 }
 0x135   : > { %718 = vmin.index.xlane.f32.xlu2 %v716_v33 }
 0x137   : > { %v401_v34 = vpop.f32.mrf.mxu0 }
 0x138   : > { %v514_v35 = vpop.f32.mrf.mxu1  ;;  %v3229_v36 = vsub.f32 %v3113_v49, %v401_v34  ;;  %v661_v34 = vsel %vm659_vm0, %v3321_v23, %v3332_v29 }
 0x139   : > { %v3232_v37 = vsub.f32 %v3115_v50, %v514_v35 }
 0x13b   : > { %vm723_vm8 = vcmp.le.f32.partialorder %v3229_v36, %v3232_v37 }
 0x13c   : > { %v724_v38 = vsel %vm723_vm8, %v3229_v36, %v3232_v37  ;;  %v709_v36 = vsel %vm707_vm6, %v3321_v23, %v3332_v29 }
 0x13d   : > { %726 = vmin.index.xlane.f32.xlu1 %v724_v38 }
 0x13f   : > { %v404_v39 = vpop.f32.mrf.mxu0 }
 0x140   : > { %v517_v40 = vpop.f32.mrf.mxu1  ;;  %v3242_v41 = vsub.f32 %v3113_v49, %v404_v39 }
 0x141   : > { %v3245_v42 = vsub.f32 %v3115_v50, %v517_v40 }
 0x143   : > { %vm731_vm9 = vcmp.le.f32.partialorder %v3242_v41, %v3245_v42 }
 0x144   : > { %v732_v43 = vsel %vm731_vm9, %v3242_v41, %v3245_v42 }
 0x145   : > { %734 = vmin.index.xlane.f32.xlu0 %v732_v43 }
 0x147   : > { %v407_v44 = vpop.f32.mrf.mxu0 }
 0x148   : > { %v520_v45 = vpop.f32.mrf.mxu1  ;;  %v3255_v46 = vsub.f32 %v3113_v49, %v407_v44 }
 0x149   : > { %v3258_v47 = vsub.f32 %v3115_v50, %v520_v45 }
 0x14b   : > { %vm739_vm10 = vcmp.le.f32.partialorder %v3255_v46, %v3258_v47 }
 0x14c   : > { %v740_v48 = vsel %vm739_vm10, %v3255_v46, %v3258_v47  ;;  %v741_v41 = vsel %vm739_vm10, %v3321_v23, %v3332_v29 }
 0x14d   : > { %742 = vmin.index.xlane.f32.xlu2 %v740_v48 }
 0x14f   : > { %v410_v51 = vpop.f32.mrf.mxu0 }
 0x150   : > { %v523_v52 = vpop.f32.mrf.mxu1  ;;  %v3268_v53 = vsub.f32 %v3113_v49, %v410_v51  ;;  %v677_v51 = vsel %vm675_vm2, %v3321_v23, %v3332_v29 }
 0x151   : > { %v3271_v56 = vsub.f32 %v3115_v50, %v523_v52 }
 0x153   : > { %vm747_vm11 = vcmp.le.f32.partialorder %v3268_v53, %v3271_v56 }
 0x154   : > { %v748_v57 = vsel %vm747_vm11, %v3268_v53, %v3271_v56  ;;  %v749_v47 = vsel %vm747_vm11, %v3321_v23, %v3332_v29 }
 0x155   : > { %750 = vmin.index.xlane.f32.xlu0 %v748_v57 }
 0x157   : > { %v413_v58 = vpop.f32.mrf.mxu0 }
 0x158   : > { %v526_v59 = vpop.f32.mrf.mxu1  ;;  %v3281_v62 = vsub.f32 %v3113_v49, %v413_v58 }
 0x159   : > { %v3284_v63 = vsub.f32 %v3115_v50, %v526_v59  ;;  %v669_v59 = vsel %vm667_vm1, %v3321_v23, %v3332_v29 }
 0x15b   : > { %vm4316_vm12 = vcmp.le.f32.partialorder %v3281_v62, %v3284_v63 }
 0x15c   : > { %v756_v0 = vsel %vm4316_vm12, %v3281_v62, %v3284_v63 }
 0x15d   : > { %758 = vmin.index.xlane.f32.xlu0 %v756_v0 }
 0x15f   : > { %v416_v1 = vpop.f32.mrf.mxu0 }
 0x160   : > { %v529_v4 = vpop.f32.mrf.mxu1  ;;  %v3294_v5 = vsub.f32 %v3113_v49, %v416_v1 }
 0x161   : > { %v3297_v6 = vsub.f32 %v3115_v50, %v529_v4 }
 0x163   : > { %vm763_vm13 = vcmp.le.f32.partialorder %v3294_v5, %v3297_v6 }
 0x164   : > { %v764_v7 = vsel %vm763_vm13, %v3294_v5, %v3297_v6 }
 0x165   : > { %766 = vmin.index.xlane.f32.xlu2 %v764_v7 }
 0x167   : > { %v419_v10 = vpop.f32.mrf.mxu0 }
 0x168   : > { %v532_v11 = vpop.f32.mrf.mxu1  ;;  %v3307_v12 = vsub.f32 %v3113_v49, %v419_v10 }
 0x169   : > { %v3310_v13 = vsub.f32 %v3115_v50, %v532_v11 }
 0x16b   : > { %vm771_vm14 = vcmp.le.f32.partialorder %v3307_v12, %v3310_v13 }
 0x16c   : > { %v772_v16 = vsel %vm771_vm14, %v3307_v12, %v3310_v13 }
 0x16d   : > { %774 = vmin.index.xlane.f32.xlu1 %v772_v16 }
 0x16f   : > { %v422_v25 = vpop.f32.mrf.mxu0 }
 0x170   : > { %v535_v19 = vpop.f32.mrf.mxu1  ;;  %v663_v22 = vpop.xlane.xlu0 %662  ;;  %v3327_v28 = vsub.f32 %v3113_v49, %v422_v25 }
 0x171   : > { %v3324_v24 = vsub.f32 %v3115_v50, %v535_v19  ;;  %2650 = vset.pattern.permute.xlu0 %v663_v22 }
 0x173   : > { %vm779_vm15 = vcmp.le.f32.partialorder %v3327_v28, %v3324_v24 }
 0x174   : > { %v780_v30 = vsel %vm779_vm15, %v3327_v28, %v3324_v24  ;;  %v781_v6 = vsel %vm779_vm15, %v3321_v23, %v3332_v29  ;;  %vm4328_vm15 = vcmp.le.f32.partialorder %v3281_v62, %v3284_v63 }
 0x175   : > { %782 = vmin.index.xlane.f32.xlu2 %v780_v30 }
 0x177   : > { %v425_v38 = vpop.f32.mrf.mxu0 }
 0x178   : > { %v538_v33 = vpop.f32.mrf.mxu1  ;;  %v671_v35 = vpop.xlane.xlu1 %670  ;;  %v3348_v40 = vsub.f32 %v3113_v49, %v425_v38  ;;  %v693_v38 = vsel %vm691_vm4, %v3321_v23, %v3332_v29 }
 0x179   : > { %v3345_v39 = vsub.f32 %v3115_v50, %v538_v33  ;;  %665 = vperm.xlu0 %2650, %v661_v34   ;;  %2651 = vset.pattern.permute.xlu1 %v671_v35 }
 0x17b   : > { %vm4317_vm12 = vcmp.le.f32.partialorder %v3348_v40, %v3345_v39 }
 0x17c   : > { %v788_v54 = vsel %vm4317_vm12, %v3348_v40, %v3345_v39 }
 0x17d   : > { %790 = vmin.index.xlane.f32.xlu1 %v788_v54 }
 0x17f   : > { %v428_v44 = vpop.f32.mrf.mxu0 }
 0x180   : > { %v679_v55 = vpop.xlane.xlu2 %678  ;;  %v541_v43 = vpop.f32.mrf.mxu1  ;;  %v3368_v7 = vsub.f32 %v3113_v49, %v428_v44 }
 0x181   : > { %2652 = vset.pattern.permute.xlu2 %v679_v55  ;;  %v3371_v2 = vsub.f32 %v3115_v50, %v541_v43 }
 0x183   : > { %vm795_vm0 = vcmp.le.f32.partialorder %v3368_v7, %v3371_v2 }
 0x184   : > { %v796_v19 = vsel %vm795_vm0, %v3368_v7, %v3371_v2  ;;  %v765_v7 = vsel %vm763_vm13, %v3321_v23, %v3332_v29 }
 0x187   : > { %v431_v48 = vpop.f32.mrf.mxu0 }
 0x188   : > { %v544_v45 = vpop.f32.mrf.mxu1  ;;  %v687_v3 = vpop.xlane.xlu2 %686  ;;  %v3407_v30 = vsub.f32 %v3113_v49, %v431_v48 }
 0x189   : > { %v3410_v33 = vsub.f32 %v3115_v50, %v544_v45  ;;  %v320_v45 = vld [vmem:[%s3087_s30 + $0xc0] sm:$0xff] }
 0x18a   : > { %448 = vmatmul.f32.gmra.mxu0 %v320_v45  ;;  %561 = vmatmul.f32.gmra.mxu1 %v320_v45 }
 0x18b   : > { %vm803_vm5 = vcmp.le.f32.partialorder %v3407_v30, %v3410_v33 }
 0x18c   : > { %v804_v54 = vsel %vm803_vm5, %v3407_v30, %v3410_v33  ;;  %v805_v2 = vsel %vm803_vm5, %v3321_v23, %v3332_v29 }
 0x18d   : > { %681 = vperm.xlu2 %2652, %v677_v51   ;;  %v685_v51 = vsel %vm683_vm3, %v3321_v23, %v3332_v29 }
 0x18f   : > { %v434_v58 = vpop.f32.mrf.mxu0 }
 0x190   : > { %v695_v52 = vpop.xlane.xlu1 %694  ;;  %v547_v57 = vpop.f32.mrf.mxu1  ;;  %v3381_v10 = vsub.f32 %v3113_v49, %v434_v58 }
 0x191   : > { %2654 = vset.pattern.permute.xlu0 %v695_v52  ;;  %v3384_v11 = vsub.f32 %v3115_v50, %v547_v57  ;;  %v321_v52 = vld [vmem:[%s3087_s30 + $0xc8] sm:$0xff] }
 0x192   : > { %451 = vmatmul.f32.gmra.mxu0 %v321_v52  ;;  %564 = vmatmul.f32.gmra.mxu1 %v321_v52 }
 0x193   : > { %vm811_vm2 = vcmp.le.f32.partialorder %v3381_v10, %v3384_v11 }
 0x194   : > { %v812_v22 = vsel %vm811_vm2, %v3381_v10, %v3384_v11  ;;  %v813_v46 = vsel %vm811_vm2, %v3321_v23, %v3332_v29 }
 0x196   : > { %673 = vperm.xlu1 %2651, %v669_v59   ;;  %v322_v59 = vld [vmem:[%s3087_s30 + $0xd0] sm:$0xff] }
 0x197   : > { %v437_v4 = vpop.f32.mrf.mxu0 }
 0x198   : > { %v703_v0 = vpop.xlane.xlu0 %702  ;;  %v550_v1 = vpop.f32.mrf.mxu1  ;;  %v3447_v57 = vsub.f32 %v3113_v49, %v437_v4  ;;  %v323_v4 = vld [vmem:[%s3087_s30 + $0xd8] sm:$0xff] }
 0x199   : > { %2655 = vset.pattern.permute.xlu2 %v703_v0  ;;  %v3450_v58 = vsub.f32 %v3115_v50, %v550_v1  ;;  %v725_v0 = vsel %vm723_vm8, %v3321_v23, %v3332_v29 }
 0x19a   : > { %454 = vmatmul.f32.gmra.mxu0 %v322_v59  ;;  %567 = vmatmul.f32.gmra.mxu1 %v322_v59 }
 0x19b   : > { %vm819_vm3 = vcmp.le.f32.partialorder %v3447_v57, %v3450_v58 }
 0x19c   : > { %v820_v9 = vsel %vm819_vm3, %v3447_v57, %v3450_v58 }
 0x19e   : > { %2653 = vset.pattern.permute.xlu1 %v687_v3 }
 0x19f   : > { %v440_v16 = vpop.f32.mrf.mxu0 }
 0x1a0   : > { %v553_v61 = vpop.f32.mrf.mxu1  ;;  %v3395_v20 = vsub.f32 %v3113_v49, %v440_v16  ;;  %v711_v21 = vpop.xlane.xlu1 %710 }
 0x1a1   : > { %705 = vperm.xlu2 %2655, %v701_v60   ;;  %v3387_v18 = vsub.f32 %v3115_v50, %v553_v61 }
 0x1a2   : > { %457 = vmatmul.f32.gmra.mxu0 %v323_v4  ;;  %570 = vmatmul.f32.gmra.mxu1 %v323_v4 }
 0x1a3   : > { %798 = vmin.index.xlane.f32.xlu0 %v796_v19  ;;  %vm827_vm1 = vcmp.le.f32.partialorder %v3395_v20, %v3387_v18 }
 0x1a4   : > { %v828_v12 = vsel %vm827_vm1, %v3395_v20, %v3387_v18 }
 0x1a7   : > { %v443_v34 = vpop.f32.mrf.mxu0 }
 0x1a8   : > { %v556_v35 = vpop.f32.mrf.mxu1  ;;  %v3425_v55 = vsub.f32 %v3113_v49, %v443_v34  ;;  %v719_v14 = vpop.xlane.xlu2 %718 }
 0x1a9   : > { %v3428_v43 = vsub.f32 %v3115_v50, %v556_v35  ;;  %v324_v35 = vld [vmem:[%s3087_s30 + $0xe0] sm:$0xff] }
 0x1aa   : > { %460 = vmatmul.f32.gmra.mxu0 %v324_v35  ;;  %573 = vmatmul.f32.gmra.mxu1 %v324_v35 }
 0x1ab   : > { %814 = vmin.index.xlane.f32.xlu0 %v812_v22  ;;  %vm835_vm12 = vcmp.le.f32.partialorder %v3425_v55, %v3428_v43 }
 0x1ac   : > { %v836_v15 = vsel %vm835_vm12, %v3425_v55, %v3428_v43 }
 0x1b0   : > { %v727_v25 = vpop.xlane.xlu1 %726 }
 0x1b1   : > { %2658 = vset.pattern.permute.xlu2 %v727_v25  ;;  %v773_v25 = vsel %vm771_vm14, %v3321_v23, %v3332_v29 }
 0x1b8   : > { %v735_v44 = vpop.xlane.xlu0 %734 }
 0x1bf   : > { %697 = vperm.xlu0 %2654, %v693_v38   ;;  %v717_v38 = vsel %vm715_vm7, %v3321_v23, %v3332_v29 }
 0x1c0   : > { %806 = vmin.index.xlane.f32.xlu1 %v804_v54  ;;  %v3482_v34 = vpop.xlane.xlu2 %742 }
 0x1c7   : > { %2657 = vset.pattern.permute.xlu0 %v719_v14  ;;  %v446_v14 = vpop.f32.mrf.mxu0 }
 0x1c8   : > { %v3438_v48 = vpop.xlane.xlu0 %750 }
 0x1ca   : > { %838 = vmin.index.xlane.f32.xlu2 %v836_v15 }
 0x1d0   : > { %v3460_v8 = vpop.xlane.xlu0 %758 }
 0x1d8   : > { %v767_v54 = vpop.xlane.xlu2 %766 }
 0x1d9   : > { %689 = vperm.xlu1 %2653, %v685_v51   ;;  %v3500_v51 = vsub.f32 %v3113_v49, %v446_v14 }
 0x1e0   : > { %v775_v1 = vpop.xlane.xlu1 %774 }
 0x1e1   : > { %2656 = vset.pattern.permute.xlu1 %v711_v21 }
 0x1e2   : > { %729 = vperm.xlu2 %2658, %v725_v0  }
 0x1e8   : > { %v3497_v15 = vpop.xlane.xlu2 %782 }
 0x1e9   : > { %822 = vmin.index.xlane.f32.xlu0 %v820_v9  ;;  %713 = vperm.xlu1 %2656, %v709_v36  }
 0x1ea   : > { %2664 = vset.pattern.permute.xlu2 %v775_v1 }
 0x1eb   : > { %v666_v37 = vpop.permute.xlu0 %665 }
 0x1ec   : > { %v915_v3 = vperm.slane %v666_v37, 0  ;;  %v916_v60 = vperm.slane %v666_v37, 1  ;;  %v917_v61 = vperm.slane %v666_v37, 2  ;;  %v918_v16 = vperm.slane %v666_v37, 3 }
 0x1ed   : > { %v919_v19 = vperm.slane %v666_v37, 4  ;;  %vm1662_vm4 = vcmp.eq.s32.totalorder %v3321_v23, %v666_v37  ;;  %vm1663_vm8 = vcmp.eq.s32.totalorder %v3332_v29, %v666_v37  ;;  %v920_v21 = vperm.slane %v666_v37, 5 }
 0x1ee   : > { %1171 = vst [vmem:[#allocation1] ss:$9 sm:$0xff] %v915_v3  ;;  %2494 = vmatmul.msk.f32.vlgmr.msra.gmra.mxu2 %vm1662_vm4, %v2943_v26  ;;  %2526 = vmatmul.msk.f32.vlgmr.msra.gmra.mxu3 %vm1663_vm8, %v2943_v26  ;;  %v921_v27 = vperm.slane %v666_v37, 6  ;;  %v922_v22 = vperm.slane %v666_v37, 7 }
 0x1ef   : > { %1173 = vst [vmem:[#allocation1 + $0x1] ss:$9 sm:$0xff] %v916_v60 }
 0x1f0   : > { %1175 = vst [vmem:[#allocation1 + $0x2] ss:$9 sm:$0xff] %v917_v61  ;;  %v3495_v13 = vpop.xlane.xlu1 %790  ;;  %v682_v3 = vpop.permute.xlu2 %681 }
 0x1f1   : > { %1177 = vst [vmem:[#allocation1 + $0x3] ss:$9 sm:$0xff] %v918_v16  ;;  %2659 = vset.pattern.permute.xlu1 %v735_v44  ;;  %v559_v44 = vpop.f32.mrf.mxu1  ;;  %vm1666_vm4 = vcmp.eq.s32.totalorder %v3321_v23, %v682_v3  ;;  %vm1667_vm8 = vcmp.eq.s32.totalorder %v3332_v29, %v682_v3  ;;  %v931_v16 = vperm.slane %v682_v3, 0  ;;  %v936_v35 = vperm.slane %v682_v3, 5 }
 0x1f2   : > { %1179 = vst [vmem:[#allocation1 + $0x4] ss:$9 sm:$0xff] %v919_v19  ;;  %777 = vperm.xlu2 %2664, %v773_v25   ;;  %v3503_v59 = vsub.f32 %v3115_v50, %v559_v44  ;;  %v932_v19 = vperm.slane %v682_v3, 1  ;;  %v935_v25 = vperm.slane %v682_v3, 4  ;;  %v938_v14 = vperm.slane %v682_v3, 7 }
 0x1f3   : > { %1181 = vst [vmem:[#allocation1 + $0x5] ss:$9 sm:$0xff] %v920_v21  ;;  %v733_v44 = vsel %vm731_vm9, %v3321_v23, %v3332_v29 }
 0x1f4   : > { %1183 = vst [vmem:[#allocation1 + $0x6] ss:$9 sm:$0xff] %v921_v27  ;;  %vm843_vm14 = vcmp.le.f32.partialorder %v3500_v51, %v3503_v59  ;;  %v933_v27 = vperm.slane %v682_v3, 2 }
 0x1f5   : > { %1185 = vst [vmem:[#allocation1 + $0x7] ss:$9 sm:$0xff] %v922_v22  ;;  %v844_v60 = vsel %vm843_vm14, %v3500_v51, %v3503_v59  ;;  %v934_v22 = vperm.slane %v682_v3, 3  ;;  %v845_v18 = vsel %vm843_vm14, %v3321_v23, %v3332_v29 }
 0x1fb   : > { %v3552_v5 = vpop.permute.xlu2 %705 }
 0x1fc   : > { %v3505_v0 = vld [vmem:[#allocation1] sm:$0xff] }
 0x1fd   : > { %721 = vperm.xlu0 %2657, %v717_v38   ;;  %v797_v38 = vsel %vm795_vm0, %v3321_v23, %v3332_v29  ;;  %vm1673_vm0 = vcmp.eq.s32.totalorder %v3332_v29, %v3552_v5 }
 0x205   : > { %2663 = vset.pattern.permute.xlu0 %v767_v54  ;;  %v937_v54 = vperm.slane %v682_v3, 6  ;;  %v821_v3 = vsel %vm819_vm3, %v3321_v23, %v3332_v29  ;;  %vm4329_vm3 = vcmp.le.f32.partialorder %v3348_v40, %v3345_v39  ;;  %v962_v39 = vperm.slane %v3552_v5, 7 }
 0x206   : > { %v789_v58 = vsel %vm4329_vm3, %v3321_v23, %v3332_v29 }
 0x208   : > { %v674_v45 = vpop.permute.xlu1 %673 }
 0x209   : > { %v923_v31 = vperm.slane %v674_v45, 0  ;;  %v924_v32 = vperm.slane %v674_v45, 1  ;;  %v925_v52 = vperm.slane %v674_v45, 2  ;;  %v926_v9 = vperm.slane %v674_v45, 3 }
 0x20a   : > { %v927_v1 = vperm.slane %v674_v45, 4  ;;  %vm1664_vm6 = vcmp.eq.s32.totalorder %v3321_v23, %v674_v45  ;;  %vm1665_vm7 = vcmp.eq.s32.totalorder %v3332_v29, %v674_v45  ;;  %v928_v4 = vperm.slane %v674_v45, 5 }
 0x20b   : > { %1187 = vst [vmem:[#allocation1] ss:$9 sm:$0xff] %v923_v31  ;;  %2495 = vmatmul.msk.f32.gmra.mxu2 %vm1664_vm6, %v2943_v26  ;;  %2527 = vmatmul.msk.f32.gmra.mxu3 %vm1665_vm7, %v2943_v26  ;;  %v929_v36 = vperm.slane %v674_v45, 6  ;;  %v930_v37 = vperm.slane %v674_v45, 7  ;;  %v837_v31 = vsel %vm835_vm12, %v3321_v23, %v3332_v29  ;;  %vm1672_vm12 = vcmp.eq.s32.totalorder %v3321_v23, %v3552_v5 }
 0x20c   : > { %1188 = vst [vmem:[#allocation1 + $0x1] ss:$9 sm:$0xff] %v924_v32 }
 0x20d   : > { %1189 = vst [vmem:[#allocation1 + $0x2] ss:$9 sm:$0xff] %v925_v52 }
 0x20e   : > { %1190 = vst [vmem:[#allocation1 + $0x3] ss:$9 sm:$0xff] %v926_v9 }
 0x20f   : > { %1191 = vst [vmem:[#allocation1 + $0x4] ss:$9 sm:$0xff] %v927_v1 }
 0x210   : > { %1192 = vst [vmem:[#allocation1 + $0x5] ss:$9 sm:$0xff] %v928_v4 }
 0x211   : > { %1193 = vst [vmem:[#allocation1 + $0x6] ss:$9 sm:$0xff] %v929_v36 }
 0x212   : > { %1194 = vst [vmem:[#allocation1 + $0x7] ss:$9 sm:$0xff] %v930_v37 }
 0x213   : > { %846 = vmin.index.xlane.f32.xlu1 %v844_v60  ;;  %2496 = vmatmul.msk.f32.gmra.mxu2 %vm1666_vm4, %v2943_v26  ;;  %v955_v60 = vperm.slane %v3552_v5, 0 }
 0x214   : > { %2528 = vmatmul.msk.f32.gmra.mxu3 %vm1667_vm8, %v2943_v26 }
 0x216   : > { %v799_v61 = vpop.xlane.xlu0 %798 }
 0x217   : > { %2667 = vset.pattern.permute.xlu2 %v799_v61  ;;  %v956_v61 = vperm.slane %v3552_v5, 1 }
 0x219   : > { %v3522_v21 = vld [vmem:[#allocation1] sm:$0xff] }
 0x21a   : > { %1196 = vst [vmem:[#allocation1] ss:$9 sm:$0xff] %v931_v16  ;;  %v958_v16 = vperm.slane %v3552_v5, 3 }
 0x21b   : > { %1197 = vst [vmem:[#allocation1 + $0x1] ss:$9 sm:$0xff] %v932_v19  ;;  %v449_v19 = vpop.f32.mrf.mxu0 }
 0x21c   : > { %1198 = vst [vmem:[#allocation1 + $0x2] ss:$9 sm:$0xff] %v933_v27  ;;  %v562_v27 = vpop.f32.mrf.mxu1 }
 0x21d   : > { %1199 = vst [vmem:[#allocation1 + $0x3] ss:$9 sm:$0xff] %v934_v22  ;;  %v959_v22 = vperm.slane %v3552_v5, 4 }
 0x21e   : > { %1200 = vst [vmem:[#allocation1 + $0x4] ss:$9 sm:$0xff] %v935_v25  ;;  %v815_v42 = vpop.xlane.xlu0 %814  ;;  %v960_v25 = vperm.slane %v3552_v5, 5 }
 0x21f   : > { %801 = vperm.xlu2 %2667, %v797_v38   ;;  %1201 = vst [vmem:[#allocation1 + $0x5] ss:$9 sm:$0xff] %v936_v35  ;;  %v961_v35 = vperm.slane %v3552_v5, 6 }
 0x220   : > { %1202 = vst [vmem:[#allocation1 + $0x6] ss:$9 sm:$0xff] %v937_v54 }
 0x221   : > { %1203 = vst [vmem:[#allocation1 + $0x7] ss:$9 sm:$0xff] %v938_v14 }
 0x227   : > { %830 = vmin.index.xlane.f32.xlu0 %v828_v12 }
 0x228   : > { %v3569_v24 = vld [vmem:[#allocation1] sm:$0xff] }
 0x22c   : > { %737 = vperm.xlu1 %2659, %v733_v44   ;;  %v452_v44 = vpop.f32.mrf.mxu0 }
 0x233   : > { %v807_v45 = vpop.xlane.xlu1 %806 }
 0x234   : > { %2668 = vset.pattern.permute.xlu2 %v807_v45  ;;  %2660 = vset.pattern.permute.xlu1 %v3482_v34  ;;  %v565_v45 = vpop.f32.mrf.mxu1 }
 0x23b   : > { %769 = vperm.xlu0 %2663, %v765_v7  }
 0x23c   : > { %809 = vperm.xlu2 %2668, %v805_v2   ;;  %745 = vperm.xlu1 %2660, %v741_v41  }
 0x23d   : > { %v839_v56 = vpop.xlane.xlu2 %838 }
 0x243   : > { %2665 = vset.pattern.permute.xlu0 %v3497_v15  ;;  %v698_v15 = vpop.permute.xlu0 %697 }
 0x244   : > { %2669 = vset.pattern.permute.xlu2 %v815_v42  ;;  %2661 = vset.pattern.permute.xlu1 %v3438_v48  ;;  %vm1670_vm11 = vcmp.eq.s32.totalorder %v3321_v23, %v698_v15  ;;  %vm1671_vm13 = vcmp.eq.s32.totalorder %v3332_v29, %v698_v15  ;;  %v947_v32 = vperm.slane %v698_v15, 0  ;;  %v948_v9 = vperm.slane %v698_v15, 1 }
 0x245   : > { %v949_v4 = vperm.slane %v698_v15, 2  ;;  %v950_v36 = vperm.slane %v698_v15, 3  ;;  %v951_v55 = vperm.slane %v698_v15, 4  ;;  %v952_v62 = vperm.slane %v698_v15, 5  ;;  %v3647_v42 = vpop.permute.xlu2 %729 }
 0x246   : > { %v953_v63 = vperm.slane %v698_v15, 6  ;;  %v954_v43 = vperm.slane %v698_v15, 7  ;;  %vm1678_vm4 = vcmp.eq.s32.totalorder %v3321_v23, %v3647_v42  ;;  %vm1679_vm8 = vcmp.eq.s32.totalorder %v3332_v29, %v3647_v42 }
 0x24b   : > { %785 = vperm.xlu0 %2665, %v781_v6   ;;  %v690_v30 = vpop.permute.xlu1 %689 }
 0x24c   : > { %v939_v33 = vperm.slane %v690_v30, 0  ;;  %v940_v48 = vperm.slane %v690_v30, 1  ;;  %v941_v34 = vperm.slane %v690_v30, 2  ;;  %817 = vperm.xlu2 %2669, %v813_v46   ;;  %753 = vperm.xlu1 %2661, %v749_v47   ;;  %v942_v28 = vperm.slane %v690_v30, 3 }
 0x24d   : > { %v943_v12 = vperm.slane %v690_v30, 4  ;;  %vm1668_vm9 = vcmp.eq.s32.totalorder %v3321_v23, %v690_v30  ;;  %vm1669_vm10 = vcmp.eq.s32.totalorder %v3332_v29, %v690_v30  ;;  %v944_v10 = vperm.slane %v690_v30, 5 }
 0x24e   : > { %1205 = vst [vmem:[#allocation1] ss:$9 sm:$0xff] %v939_v33  ;;  %2497 = vmatmul.msk.f32.gmra.mxu2 %vm1668_vm9, %v2943_v26  ;;  %2529 = vmatmul.msk.f32.gmra.mxu3 %vm1669_vm10, %v2943_v26  ;;  %v945_v53 = vperm.slane %v690_v30, 6  ;;  %v946_v11 = vperm.slane %v690_v30, 7  ;;  %v568_v33 = vpop.f32.mrf.mxu1 }
 0x24f   : > { %1206 = vst [vmem:[#allocation1 + $0x1] ss:$9 sm:$0xff] %v940_v48  ;;  %v3678_v15 = vsub.f32 %v3115_v50, %v568_v33  ;;  %v982_v33 = vperm.slane %v3647_v42, 3 }
 0x250   : > { %1207 = vst [vmem:[#allocation1 + $0x2] ss:$9 sm:$0xff] %v941_v34  ;;  %v455_v34 = vpop.f32.mrf.mxu0 }
 0x251   : > { %1208 = vst [vmem:[#allocation1 + $0x3] ss:$9 sm:$0xff] %v942_v28  ;;  %v3662_v28 = vsub.f32 %v3113_v49, %v449_v19 }
 0x252   : > { %1209 = vst [vmem:[#allocation1 + $0x4] ss:$9 sm:$0xff] %v943_v12  ;;  %v3665_v12 = vsub.f32 %v3115_v50, %v562_v27  ;;  %v2685_v27 = vld [vmem:[%s3087_s30] sm:$0xff] }
 0x253   : > { %2672 = vset.pattern.permute.xlu0 %v839_v56  ;;  %1210 = vst [vmem:[#allocation1 + $0x5] ss:$9 sm:$0xff] %v944_v10  ;;  %v3672_v56 = vsub.f32 %v3113_v49, %v452_v44 }
 0x254   : > { %1211 = vst [vmem:[#allocation1 + $0x6] ss:$9 sm:$0xff] %v945_v53  ;;  %2662 = vset.pattern.permute.xlu1 %v3460_v8  ;;  %v757_v8 = vsel %vm4328_vm15, %v3321_v23, %v3332_v29  ;;  %vm851_vm9 = vcmp.le.f32.partialorder %v3662_v28, %v3665_v12 }
 0x255   : > { %1212 = vst [vmem:[#allocation1 + $0x7] ss:$9 sm:$0xff] %v946_v11  ;;  %v3675_v11 = vsub.f32 %v3115_v50, %v565_v45 }
 0x256   : > { %2498 = vmatmul.msk.f32.gmra.mxu2 %vm1670_vm11, %v2943_v26  ;;  %2530 = vmatmul.msk.f32.gmra.mxu3 %vm1671_vm13, %v2943_v26 }
 0x257   : > { %vm859_vm10 = vcmp.le.f32.partialorder %v3672_v56, %v3675_v11 }
 0x258   : > { %v860_v51 = vsel %vm859_vm10, %v3672_v56, %v3675_v11 }
 0x25b   : > { %841 = vperm.xlu0 %2672, %v837_v31   ;;  %v3598_v37 = vpop.permute.xlu1 %713  ;;  %v3681_v31 = vsub.f32 %v3113_v49, %v455_v34  ;;  %v2687_v34 = vld [vmem:[%s3087_s30 + $0x10] sm:$0xff] }
 0x25c   : > { %v823_v52 = vpop.xlane.xlu0 %822  ;;  %v3590_v1 = vld [vmem:[#allocation1] sm:$0xff]  ;;  %761 = vperm.xlu1 %2662, %v757_v8   ;;  %vm1674_vm2 = vcmp.eq.s32.totalorder %v3321_v23, %v3598_v37  ;;  %vm1675_vm5 = vcmp.eq.s32.totalorder %v3332_v29, %v3598_v37  ;;  %v963_v7 = vperm.slane %v3598_v37, 0  ;;  %v964_v41 = vperm.slane %v3598_v37, 1 }
 0x25d   : > { %2670 = vset.pattern.permute.xlu2 %v823_v52  ;;  %1214 = vst [vmem:[#allocation1] ss:$9 sm:$0xff] %v947_v32  ;;  %v966_v6 = vperm.slane %v3598_v37, 3  ;;  %v967_v30 = vperm.slane %v3598_v37, 4  ;;  %v968_v46 = vperm.slane %v3598_v37, 5  ;;  %v969_v47 = vperm.slane %v3598_v37, 6  ;;  %v571_v32 = vpop.f32.mrf.mxu1 }
 0x25e   : > { %1215 = vst [vmem:[#allocation1 + $0x1] ss:$9 sm:$0xff] %v948_v9  ;;  %2499 = vmatmul.msk.f32.gmra.mxu2 %vm1672_vm12, %v2943_v26  ;;  %2531 = vmatmul.msk.f32.gmra.mxu3 %vm1673_vm0, %v2943_v26  ;;  %v970_v48 = vperm.slane %v3598_v37, 7  ;;  %v458_v9 = vpop.f32.mrf.mxu0  ;;  %vm867_vm11 = vcmp.le.f32.partialorder %v3681_v31, %v3678_v15 }
 0x25f   : > { %1216 = vst [vmem:[#allocation1 + $0x2] ss:$9 sm:$0xff] %v949_v4  ;;  %v3685_v4 = vsub.f32 %v3115_v50, %v571_v32  ;;  %v985_v32 = vperm.slane %v3647_v42, 6 }
 0x260   : > { %1217 = vst [vmem:[#allocation1 + $0x3] ss:$9 sm:$0xff] %v950_v36  ;;  %v852_v36 = vsel %vm851_vm9, %v3662_v28, %v3665_v12  ;;  %v327_v28 = vld [vmem:[%s3087_s30 + $0xf8] sm:$0xff] }
 0x261   : > { %1218 = vst [vmem:[#allocation1 + $0x4] ss:$9 sm:$0xff] %v951_v55 }
 0x262   : > { %1219 = vst [vmem:[#allocation1 + $0x5] ss:$9 sm:$0xff] %v952_v62 }
 0x263   : > { %1220 = vst [vmem:[#allocation1 + $0x6] ss:$9 sm:$0xff] %v953_v63  ;;  %v3700_v63 = vsub.f32 %v3113_v49, %v458_v9 }
 0x264   : > { %1221 = vst [vmem:[#allocation1 + $0x7] ss:$9 sm:$0xff] %v954_v43  ;;  %2666 = vset.pattern.permute.xlu1 %v3495_v13  ;;  %v957_v13 = vperm.slane %v3552_v5, 2  ;;  %v965_v5 = vperm.slane %v3598_v37, 2 }
 0x265   : > { %825 = vperm.xlu2 %2670, %v821_v3   ;;  %vm875_vm13 = vcmp.le.f32.partialorder %v3700_v63, %v3685_v4 }
 0x266   : > { %2500 = vmatmul.msk.f32.gmra.mxu2 %vm1674_vm2, %v2943_v26  ;;  %2532 = vmatmul.msk.f32.gmra.mxu3 %vm1675_vm5, %v2943_v26 }
 0x26b   : > { %v3614_v57 = vld [vmem:[#allocation1] sm:$0xff] }
 0x26c   : > { %1223 = vst [vmem:[#allocation1] ss:$9 sm:$0xff] %v955_v60  ;;  %793 = vperm.xlu1 %2666, %v789_v58  }
 0x26d   : > { %1224 = vst [vmem:[#allocation1 + $0x1] ss:$9 sm:$0xff] %v956_v61  ;;  %v574_v61 = vpop.f32.mrf.mxu1 }
 0x26e   : > { %1225 = vst [vmem:[#allocation1 + $0x2] ss:$9 sm:$0xff] %v957_v13  ;;  %v461_v13 = vpop.f32.mrf.mxu0 }
 0x26f   : > { %1226 = vst [vmem:[#allocation1 + $0x3] ss:$9 sm:$0xff] %v958_v16  ;;  %v3627_v40 = vpop.permute.xlu0 %721  ;;  %v3709_v16 = vsub.f32 %v3115_v50, %v574_v61 }
 0x270   : > { %1227 = vst [vmem:[#allocation1 + $0x4] ss:$9 sm:$0xff] %v959_v22  ;;  %vm1676_vm6 = vcmp.eq.s32.totalorder %v3321_v23, %v3627_v40  ;;  %vm1677_vm7 = vcmp.eq.s32.totalorder %v3332_v29, %v3627_v40  ;;  %v971_v10 = vperm.slane %v3627_v40, 0  ;;  %v972_v53 = vperm.slane %v3627_v40, 1 }
 0x271   : > { %1228 = vst [vmem:[#allocation1 + $0x5] ss:$9 sm:$0xff] %v960_v25  ;;  %v1871_v38 = vpop.f32.mrf.mxu2  ;;  %v1984_v54 = vpop.f32.mrf.mxu3  ;;  %2501 = vmatmul.msk.f32.gmra.mxu2 %vm1676_vm6, %v2943_v26  ;;  %2533 = vmatmul.msk.f32.gmra.mxu3 %vm1677_vm7, %v2943_v26  ;;  %v973_v8 = vperm.slane %v3627_v40, 2  ;;  %v974_v62 = vperm.slane %v3627_v40, 3  ;;  %v975_v43 = vperm.slane %v3627_v40, 4  ;;  %v976_v37 = vperm.slane %v3627_v40, 5 }
 0x272   : > { %1229 = vst [vmem:[#allocation1 + $0x6] ss:$9 sm:$0xff] %v961_v35  ;;  %v3633_v14 = vadd.f32 %v1984_v54, %v1871_v38  ;;  %v977_v3 = vperm.slane %v3627_v40, 6  ;;  %v978_v60 = vperm.slane %v3627_v40, 7  ;;  %v3714_v25 = vsub.f32 %v3113_v49, %v461_v13 }
 0x273   : > { %1230 = vst [vmem:[#allocation1 + $0x7] ss:$9 sm:$0xff] %v962_v39  ;;  %v2686_v39 = vld [vmem:[%s3087_s30 + $0x8] sm:$0xff] }
 0x274   : > { %2080 = vst [vmem:[%s3640_s24] sm:$0xff] %v3633_v14  ;;  %v2112_v22 = vsub.f32 %v3633_v14, %v2685_v27  ;;  %vm883_vm15 = vcmp.le.f32.partialorder %v3714_v25, %v3709_v16  ;;  %v979_v14 = vperm.slane %v3647_v42, 0 }
 0x275   : > { %v884_v38 = vsel %vm883_vm15, %v3714_v25, %v3709_v16  ;;  %v885_v12 = vsel %vm883_vm15, %v3321_v23, %v3332_v29 }
 0x276   : > { %v2144_v54 = vmul.f32 %v2112_v22, %v2112_v22 }
 0x279   : > { %2502 = vmatmul.msk.f32.gmra.mxu2 %vm1678_vm4, %v2943_v26  ;;  %2534 = vmatmul.msk.f32.gmra.mxu3 %vm1679_vm8, %v2943_v26 }
 0x27a   : > { %v3644_v2 = vld [vmem:[#allocation1] sm:$0xff] }
 0x27b   : > { %1232 = vst [vmem:[#allocation1] ss:$9 sm:$0xff] %v963_v7 }
 0x27c   : > { %1233 = vst [vmem:[#allocation1 + $0x1] ss:$9 sm:$0xff] %v964_v41  ;;  %v980_v41 = vperm.slane %v3647_v42, 1 }
 0x27d   : > { %1234 = vst [vmem:[#allocation1 + $0x2] ss:$9 sm:$0xff] %v965_v5 }
 0x27e   : > { %1235 = vst [vmem:[#allocation1 + $0x3] ss:$9 sm:$0xff] %v966_v6 }
 0x27f   : > { %1236 = vst [vmem:[#allocation1 + $0x4] ss:$9 sm:$0xff] %v967_v30  ;;  %v981_v30 = vperm.slane %v3647_v42, 2 }
 0x280   : > { %1237 = vst [vmem:[#allocation1 + $0x5] ss:$9 sm:$0xff] %v968_v46 }
 0x281   : > { %1238 = vst [vmem:[#allocation1 + $0x6] ss:$9 sm:$0xff] %v969_v47 }
 0x282   : > { %1239 = vst [vmem:[#allocation1 + $0x7] ss:$9 sm:$0xff] %v970_v48  ;;  %v983_v48 = vperm.slane %v3647_v42, 4 }
 0x285   : > { %854 = vmin.index.xlane.f32.xlu0 %v852_v36 }
 0x286   : > { %v847_v52 = vpop.xlane.xlu1 %846 }
 0x287   : > { %2673 = vset.pattern.permute.xlu2 %v847_v52 }
 0x289   : > { %v3692_v55 = vld [vmem:[#allocation1] sm:$0xff] }
 0x28a   : > { %1241 = vst [vmem:[#allocation1] ss:$9 sm:$0xff] %v971_v10 }
 0x28b   : > { %1242 = vst [vmem:[#allocation1 + $0x1] ss:$9 sm:$0xff] %v972_v53  ;;  %v984_v53 = vperm.slane %v3647_v42, 5 }
 0x28c   : > { %1243 = vst [vmem:[#allocation1 + $0x2] ss:$9 sm:$0xff] %v973_v8  ;;  %v986_v8 = vperm.slane %v3647_v42, 7  ;;  %v829_v42 = vsel %vm827_vm1, %v3321_v23, %v3332_v29 }
 0x28d   : > { %1244 = vst [vmem:[#allocation1 + $0x3] ss:$9 sm:$0xff] %v974_v62 }
 0x28e   : > { %1245 = vst [vmem:[#allocation1 + $0x4] ss:$9 sm:$0xff] %v975_v43  ;;  %v1874_v58 = vpop.f32.mrf.mxu2  ;;  %v1987_v19 = vpop.f32.mrf.mxu3  ;;  %886 = vmin.index.xlane.f32.xlu2 %v884_v38 }
 0x28f   : > { %1246 = vst [vmem:[#allocation1 + $0x5] ss:$9 sm:$0xff] %v976_v37  ;;  %v1988_v35 = vadd.f32 %v1987_v19, %v1874_v58  ;;  %v325_v37 = vld [vmem:[%s3087_s30 + $0xe8] sm:$0xff] }
 0x290   : > { %1247 = vst [vmem:[#allocation1 + $0x6] ss:$9 sm:$0xff] %v977_v3  ;;  %463 = vmatmul.f32.gmra.mxu0 %v325_v37  ;;  %576 = vmatmul.f32.gmra.mxu1 %v325_v37 }
 0x291   : > { %1248 = vst [vmem:[#allocation1 + $0x7] ss:$9 sm:$0xff] %v978_v60  ;;  %v2113_v40 = vsub.f32 %v1988_v35, %v2686_v39 }
 0x292   : > { %2081 = vst [vmem:[%s3640_s24 + $0x8] sm:$0xff] %v1988_v35 }
 0x293   : > { %v2145_v44 = vmul.f32 %v2113_v40, %v2113_v40 }
 0x295   : > { %v2176_v45 = vadd.f32 %v2145_v44, %v2144_v54 }
 0x296   : > { %v1877_v7 = vpop.f32.mrf.mxu2 }
 0x297   : > { %v1990_v6 = vpop.f32.mrf.mxu3 }
 0x298   : > { %v3727_v5 = vld [vmem:[#allocation1] sm:$0xff]  ;;  %v1991_v46 = vadd.f32 %v1990_v6, %v1877_v7  ;;  %v868_v6 = vsel %vm867_vm11, %v3681_v31, %v3678_v15  ;;  %v2698_v15 = vld [vmem:[%s3087_s30 + $0x68] sm:$0xff] }
 0x299   : > { %1250 = vst [vmem:[#allocation1] ss:$9 sm:$0xff] %v979_v14 }
 0x29a   : > { %v831_v47 = vpop.xlane.xlu0 %830  ;;  %1251 = vst [vmem:[#allocation1 + $0x1] ss:$9 sm:$0xff] %v980_v41  ;;  %v2114_v10 = vsub.f32 %v1991_v46, %v2687_v34 }
 0x29b   : > { %2671 = vset.pattern.permute.xlu1 %v831_v47  ;;  %1252 = vst [vmem:[#allocation1 + $0x2] ss:$9 sm:$0xff] %v981_v30 }
 0x29c   : > { %1253 = vst [vmem:[#allocation1 + $0x3] ss:$9 sm:$0xff] %v982_v33  ;;  %v2146_v52 = vmul.f32 %v2114_v10, %v2114_v10  ;;  %v876_v10 = vsel %vm875_vm13, %v3700_v63, %v3685_v4 }
 0x29d   : > { %1254 = vst [vmem:[#allocation1 + $0x4] ss:$9 sm:$0xff] %v983_v48 }
 0x29e   : > { %1255 = vst [vmem:[#allocation1 + $0x5] ss:$9 sm:$0xff] %v984_v53  ;;  %v738_v9 = vpop.permute.xlu1 %737  ;;  %v3736_v36 = vadd.f32 %v2176_v45, %v2146_v52 }
 0x29f   : > { %1256 = vst [vmem:[#allocation1 + $0x6] ss:$9 sm:$0xff] %v985_v32  ;;  %vm1680_vm12 = vcmp.eq.s32.totalorder %v3321_v23, %v738_v9  ;;  %vm1681_vm0 = vcmp.eq.s32.totalorder %v3332_v29, %v738_v9  ;;  %v987_v62 = vperm.slane %v738_v9, 0  ;;  %v988_v43 = vperm.slane %v738_v9, 1 }
 0x2a0   : > { %1257 = vst [vmem:[#allocation1 + $0x7] ss:$9 sm:$0xff] %v986_v8  ;;  %2503 = vmatmul.msk.f32.gmra.mxu2 %vm1680_vm12, %v2943_v26  ;;  %2535 = vmatmul.msk.f32.gmra.mxu3 %vm1681_vm0, %v2943_v26  ;;  %v989_v3 = vperm.slane %v738_v9, 2  ;;  %v990_v61 = vperm.slane %v738_v9, 3  ;;  %v991_v58 = vperm.slane %v738_v9, 4  ;;  %v992_v13 = vperm.slane %v738_v9, 5 }
 0x2a1   : > { %2082 = vst [vmem:[%s3640_s24 + $0x10] sm:$0xff] %v1991_v46  ;;  %v993_v19 = vperm.slane %v738_v9, 6  ;;  %v994_v27 = vperm.slane %v738_v9, 7 }
 0x2a3   : > { %833 = vperm.xlu1 %2671, %v829_v42  }
 0x2a6   : > { %849 = vperm.xlu2 %2673, %v845_v18  }
 0x2a7   : > { %v3749_v60 = vld [vmem:[#allocation1] sm:$0xff] }
 0x2a8   : > { %1259 = vst [vmem:[#allocation1] ss:$9 sm:$0xff] %v987_v62 }
 0x2a9   : > { %1260 = vst [vmem:[#allocation1 + $0x1] ss:$9 sm:$0xff] %v988_v43 }
 0x2aa   : > { %1261 = vst [vmem:[#allocation1 + $0x2] ss:$9 sm:$0xff] %v989_v3 }
 0x2ab   : > { %1262 = vst [vmem:[#allocation1 + $0x3] ss:$9 sm:$0xff] %v990_v61 }
 0x2ac   : > { %1263 = vst [vmem:[#allocation1 + $0x4] ss:$9 sm:$0xff] %v991_v58 }
 0x2ad   : > { %1264 = vst [vmem:[#allocation1 + $0x5] ss:$9 sm:$0xff] %v992_v13 }
 0x2ae   : > { %1265 = vst [vmem:[#allocation1 + $0x6] ss:$9 sm:$0xff] %v993_v19  ;;  %v746_v20 = vpop.permute.xlu1 %745 }
 0x2af   : > { %1266 = vst [vmem:[#allocation1 + $0x7] ss:$9 sm:$0xff] %v994_v27  ;;  %vm1682_vm1 = vcmp.eq.s32.totalorder %v3321_v23, %v746_v20  ;;  %vm1683_vm2 = vcmp.eq.s32.totalorder %v3332_v29, %v746_v20  ;;  %v995_v22 = vperm.slane %v746_v20, 0  ;;  %v996_v35 = vperm.slane %v746_v20, 1  ;;  %v2688_v27 = vld [vmem:[%s3087_s30 + $0x18] sm:$0xff] }
 0x2b0   : > { %2504 = vmatmul.msk.f32.gmra.mxu2 %vm1682_vm1, %v2943_v26  ;;  %2536 = vmatmul.msk.f32.gmra.mxu3 %vm1683_vm2, %v2943_v26  ;;  %v997_v59 = vperm.slane %v746_v20, 2  ;;  %v998_v40 = vperm.slane %v746_v20, 3  ;;  %v999_v38 = vperm.slane %v746_v20, 4  ;;  %v1000_v54 = vperm.slane %v746_v20, 5 }
 0x2b1   : > { %v1001_v44 = vperm.slane %v746_v20, 6  ;;  %v1002_v14 = vperm.slane %v746_v20, 7  ;;  %v770_v20 = vpop.permute.xlu0 %769 }
 0x2b2   : > { %vm1688_vm7 = vcmp.eq.s32.totalorder %v3321_v23, %v770_v20  ;;  %vm1689_vm4 = vcmp.eq.s32.totalorder %v3332_v29, %v770_v20 }
 0x2b6   : > { %v3765_v39 = vld [vmem:[#allocation1] sm:$0xff] }
 0x2b7   : > { %1268 = vst [vmem:[#allocation1] ss:$9 sm:$0xff] %v995_v22 }
 0x2b8   : > { %1269 = vst [vmem:[#allocation1 + $0x1] ss:$9 sm:$0xff] %v996_v35 }
 0x2b9   : > { %1270 = vst [vmem:[#allocation1 + $0x2] ss:$9 sm:$0xff] %v997_v59 }
 0x2ba   : > { %1271 = vst [vmem:[#allocation1 + $0x3] ss:$9 sm:$0xff] %v998_v40 }
 0x2bb   : > { %1272 = vst [vmem:[#allocation1 + $0x4] ss:$9 sm:$0xff] %v999_v38  ;;  %v2689_v38 = vld [vmem:[%s3087_s30 + $0x20] sm:$0xff] }
 0x2bc   : > { %1273 = vst [vmem:[#allocation1 + $0x5] ss:$9 sm:$0xff] %v1000_v54 }
 0x2bd   : > { %1274 = vst [vmem:[#allocation1 + $0x6] ss:$9 sm:$0xff] %v1001_v44  ;;  %v778_v44 = vpop.permute.xlu2 %777 }
 0x2be   : > { %1275 = vst [vmem:[#allocation1 + $0x7] ss:$9 sm:$0xff] %v1002_v14  ;;  %v754_v45 = vpop.permute.xlu1 %753  ;;  %v1019_v14 = vperm.slane %v770_v20, 0  ;;  %vm1690_vm8 = vcmp.eq.s32.totalorder %v3321_v23, %v778_v44  ;;  %vm1691_vm12 = vcmp.eq.s32.totalorder %v3332_v29, %v778_v44 }
 0x2bf   : > { %v1003_v7 = vperm.slane %v754_v45, 0  ;;  %v1004_v41 = vperm.slane %v754_v45, 1  ;;  %vm1684_vm14 = vcmp.eq.s32.totalorder %v3321_v23, %v754_v45  ;;  %vm1685_vm5 = vcmp.eq.s32.totalorder %v3332_v29, %v754_v45 }
 0x2c0   : > { %v1005_v30 = vperm.slane %v754_v45, 2  ;;  %2505 = vmatmul.msk.f32.gmra.mxu2 %vm1684_vm14, %v2943_v26  ;;  %2537 = vmatmul.msk.f32.gmra.mxu3 %vm1685_vm5, %v2943_v26  ;;  %v1006_v47 = vperm.slane %v754_v45, 3  ;;  %v1007_v33 = vperm.slane %v754_v45, 4  ;;  %v1008_v48 = vperm.slane %v754_v45, 5 }
 0x2c1   : > { %v1009_v34 = vperm.slane %v754_v45, 6  ;;  %v1010_v53 = vperm.slane %v754_v45, 7  ;;  %v1020_v45 = vperm.slane %v770_v20, 1 }
 0x2c5   : > { %v3776_v46 = vld [vmem:[#allocation1] sm:$0xff] }
 0x2c6   : > { %1277 = vst [vmem:[#allocation1] ss:$9 sm:$0xff] %v1003_v7 }
 0x2c7   : > { %1278 = vst [vmem:[#allocation1 + $0x1] ss:$9 sm:$0xff] %v1004_v41  ;;  %v1021_v41 = vperm.slane %v770_v20, 2 }
 0x2c8   : > { %1279 = vst [vmem:[#allocation1 + $0x2] ss:$9 sm:$0xff] %v1005_v30 }
 0x2c9   : > { %1280 = vst [vmem:[#allocation1 + $0x3] ss:$9 sm:$0xff] %v1006_v47  ;;  %v1023_v47 = vperm.slane %v770_v20, 4 }
 0x2ca   : > { %1281 = vst [vmem:[#allocation1 + $0x4] ss:$9 sm:$0xff] %v1007_v33  ;;  %v1024_v33 = vperm.slane %v770_v20, 5 }
 0x2cb   : > { %1282 = vst [vmem:[#allocation1 + $0x5] ss:$9 sm:$0xff] %v1008_v48  ;;  %v1025_v48 = vperm.slane %v770_v20, 6 }
 0x2cc   : > { %1283 = vst [vmem:[#allocation1 + $0x6] ss:$9 sm:$0xff] %v1009_v34  ;;  %v1026_v34 = vperm.slane %v770_v20, 7 }
 0x2cd   : > { %1284 = vst [vmem:[#allocation1 + $0x7] ss:$9 sm:$0xff] %v1010_v53  ;;  %862 = vmin.index.xlane.f32.xlu1 %v860_v51  ;;  %v1027_v53 = vperm.slane %v778_v44, 0 }
 0x2ce   : > { %v762_v32 = vpop.permute.xlu1 %761 }
 0x2cf   : > { %v1011_v52 = vperm.slane %v762_v32, 0  ;;  %v1012_v8 = vperm.slane %v762_v32, 1  ;;  %v1013_v9 = vperm.slane %v762_v32, 2  ;;  %v1014_v62 = vperm.slane %v762_v32, 3 }
 0x2d0   : > { %v1015_v43 = vperm.slane %v762_v32, 4  ;;  %vm1686_vm3 = vcmp.eq.s32.totalorder %v3321_v23, %v762_v32  ;;  %vm1687_vm6 = vcmp.eq.s32.totalorder %v3332_v29, %v762_v32  ;;  %v1016_v37 = vperm.slane %v762_v32, 5 }
 0x2d1   : > { %v1880_v3 = vpop.f32.mrf.mxu2  ;;  %2506 = vmatmul.msk.f32.gmra.mxu2 %vm1686_vm3, %v2943_v26  ;;  %v1993_v61 = vpop.f32.mrf.mxu3  ;;  %2538 = vmatmul.msk.f32.gmra.mxu3 %vm1687_vm6, %v2943_v26  ;;  %v1017_v58 = vperm.slane %v762_v32, 6  ;;  %v1018_v19 = vperm.slane %v762_v32, 7  ;;  %v1028_v32 = vperm.slane %v778_v44, 1 }
 0x2d2   : > { %v1994_v13 = vadd.f32 %v1993_v61, %v1880_v3  ;;  %v1034_v3 = vperm.slane %v778_v44, 7 }
 0x2d4   : > { %v3783_v42 = vld [vmem:[#allocation1] sm:$0xff]  ;;  %v2115_v18 = vsub.f32 %v1994_v13, %v2688_v27  ;;  %2083 = vst [vmem:[%s3640_s24 + $0x18] sm:$0xff] %v1994_v13 }
 0x2d5   : > { %1286 = vst [vmem:[#allocation1] ss:$9 sm:$0xff] %v1011_v52  ;;  %870 = vmin.index.xlane.f32.xlu1 %v868_v6  ;;  %v1022_v6 = vperm.slane %v770_v20, 3 }
 0x2d6   : > { %1287 = vst [vmem:[#allocation1 + $0x1] ss:$9 sm:$0xff] %v1012_v8  ;;  %v2147_v22 = vmul.f32 %v2115_v18, %v2115_v18  ;;  %v1029_v8 = vperm.slane %v778_v44, 2 }
 0x2d7   : > { %1288 = vst [vmem:[#allocation1 + $0x2] ss:$9 sm:$0xff] %v1013_v9  ;;  %v1030_v9 = vperm.slane %v778_v44, 3 }
 0x2d8   : > { %1289 = vst [vmem:[#allocation1 + $0x3] ss:$9 sm:$0xff] %v1014_v62  ;;  %v2178_v35 = vadd.f32 %v3736_v36, %v2147_v22  ;;  %v1031_v62 = vperm.slane %v778_v44, 4 }
 0x2d9   : > { %1290 = vst [vmem:[#allocation1 + $0x4] ss:$9 sm:$0xff] %v1015_v43  ;;  %v1883_v51 = vpop.f32.mrf.mxu2  ;;  %2507 = vmatmul.msk.f32.gmra.mxu2 %vm1688_vm7, %v2943_v26  ;;  %v1996_v59 = vpop.f32.mrf.mxu3  ;;  %2539 = vmatmul.msk.f32.gmra.mxu3 %vm1689_vm4, %v2943_v26  ;;  %v1032_v43 = vperm.slane %v778_v44, 5 }
 0x2da   : > { %1291 = vst [vmem:[#allocation1 + $0x5] ss:$9 sm:$0xff] %v1016_v37  ;;  %v1997_v40 = vadd.f32 %v1996_v59, %v1883_v51  ;;  %v1033_v37 = vperm.slane %v778_v44, 6 }
 0x2db   : > { %1292 = vst [vmem:[#allocation1 + $0x6] ss:$9 sm:$0xff] %v1017_v58 }
 0x2dc   : > { %1293 = vst [vmem:[#allocation1 + $0x7] ss:$9 sm:$0xff] %v1018_v19  ;;  %v2116_v54 = vsub.f32 %v1997_v40, %v2689_v38 }
 0x2dd   : > { %878 = vmin.index.xlane.f32.xlu1 %v876_v10  ;;  %2084 = vst [vmem:[%s3640_s24 + $0x20] sm:$0xff] %v1997_v40  ;;  %v786_v10 = vpop.permute.xlu0 %785 }
 0x2de   : > { %v2148_v36 = vmul.f32 %v2116_v54, %v2116_v54  ;;  %vm1692_vm0 = vcmp.eq.s32.totalorder %v3321_v23, %v786_v10  ;;  %vm1693_vm1 = vcmp.eq.s32.totalorder %v3332_v29, %v786_v10  ;;  %v3812_v61 = vpop.permute.xlu1 %793  ;;  %v1035_v58 = vperm.slane %v786_v10, 0  ;;  %v2690_v54 = vld [vmem:[%s3087_s30 + $0x28] sm:$0xff] }
 0x2df   : > { %v1036_v13 = vperm.slane %v786_v10, 1  ;;  %v1037_v27 = vperm.slane %v786_v10, 2  ;;  %vm1694_vm2 = vcmp.eq.s32.totalorder %v3321_v23, %v3812_v61  ;;  %vm1695_vm14 = vcmp.eq.s32.totalorder %v3332_v29, %v3812_v61 }
 0x2e0   : > { %v3800_v30 = vadd.f32 %v2178_v35, %v2148_v36  ;;  %v1038_v18 = vperm.slane %v786_v10, 3  ;;  %v3822_v35 = vpop.permute.xlu2 %801  ;;  %v1039_v51 = vperm.slane %v786_v10, 4  ;;  %v1040_v40 = vperm.slane %v786_v10, 5 }
 0x2e1   : > { %2508 = vmatmul.msk.f32.gmra.mxu2 %vm1690_vm8, %v2943_v26  ;;  %2540 = vmatmul.msk.f32.gmra.mxu3 %vm1691_vm12, %v2943_v26  ;;  %v1886_v20 = vpop.f32.mrf.mxu2  ;;  %v1999_v22 = vpop.f32.mrf.mxu3  ;;  %v1041_v38 = vperm.slane %v786_v10, 6  ;;  %vm1696_vm5 = vcmp.eq.s32.totalorder %v3321_v23, %v3822_v35  ;;  %vm1697_vm3 = vcmp.eq.s32.totalorder %v3332_v29, %v3822_v35 }
 0x2e2   : > { %v2000_v59 = vadd.f32 %v1999_v22, %v1886_v20 }
 0x2e3   : > { %v3798_v7 = vld [vmem:[#allocation1] sm:$0xff] }
 0x2e4   : > { %1295 = vst [vmem:[#allocation1] ss:$9 sm:$0xff] %v1019_v14  ;;  %v2117_v44 = vsub.f32 %v2000_v59, %v2690_v54  ;;  %v1042_v14 = vperm.slane %v786_v10, 7  ;;  %v1051_v54 = vperm.slane %v3822_v35, 0 }
 0x2e5   : > { %1296 = vst [vmem:[#allocation1 + $0x1] ss:$9 sm:$0xff] %v1020_v45 }
 0x2e6   : > { %1297 = vst [vmem:[#allocation1 + $0x2] ss:$9 sm:$0xff] %v1021_v41  ;;  %v2149_v45 = vmul.f32 %v2117_v44, %v2117_v44 }
 0x2e7   : > { %1298 = vst [vmem:[#allocation1 + $0x3] ss:$9 sm:$0xff] %v1022_v6 }
 0x2e8   : > { %1299 = vst [vmem:[#allocation1 + $0x4] ss:$9 sm:$0xff] %v1023_v47  ;;  %v2180_v36 = vadd.f32 %v3800_v30, %v2149_v45  ;;  %v3833_v47 = vpop.permute.xlu2 %809  ;;  %v1043_v30 = vperm.slane %v3812_v61, 0 }
 0x2e9   : > { %1300 = vst [vmem:[#allocation1 + $0x5] ss:$9 sm:$0xff] %v1024_v33  ;;  %2509 = vmatmul.msk.f32.gmra.mxu2 %vm1692_vm0, %v2943_v26  ;;  %2541 = vmatmul.msk.f32.gmra.mxu3 %vm1693_vm1, %v2943_v26  ;;  %v1889_v41 = vpop.f32.mrf.mxu2  ;;  %v2002_v6 = vpop.f32.mrf.mxu3  ;;  %vm1698_vm6 = vcmp.eq.s32.totalorder %v3321_v23, %v3833_v47  ;;  %vm1699_vm7 = vcmp.eq.s32.totalorder %v3332_v29, %v3833_v47  ;;  %v1065_v16 = vperm.slane %v3833_v47, 6  ;;  %v1066_v25 = vperm.slane %v3833_v47, 7 }
 0x2ea   : > { %1301 = vst [vmem:[#allocation1 + $0x6] ss:$9 sm:$0xff] %v1025_v48  ;;  %v2003_v33 = vadd.f32 %v2002_v6, %v1889_v41  ;;  %v2691_v48 = vld [vmem:[%s3087_s30 + $0x30] sm:$0xff]  ;;  %v1053_v6 = vperm.slane %v3822_v35, 2 }
 0x2eb   : > { %1302 = vst [vmem:[#allocation1 + $0x7] ss:$9 sm:$0xff] %v1026_v34 }
 0x2ec   : > { %2085 = vst [vmem:[%s3640_s24 + $0x28] sm:$0xff] %v2000_v59  ;;  %v2118_v34 = vsub.f32 %v2003_v33, %v2691_v48  ;;  %v1054_v48 = vperm.slane %v3822_v35, 3 }
 0x2ed   : > { %2086 = vst [vmem:[%s3640_s24 + $0x30] sm:$0xff] %v2003_v33 }
 0x2f1   : > { %2510 = vmatmul.msk.f32.gmra.mxu2 %vm1694_vm2, %v2943_v26  ;;  %2542 = vmatmul.msk.f32.gmra.mxu3 %vm1695_vm14, %v2943_v26 }
 0x2f2   : > { %v3810_v52 = vld [vmem:[#allocation1] sm:$0xff] }
 0x2f3   : > { %1304 = vst [vmem:[#allocation1] ss:$9 sm:$0xff] %v1027_v53  ;;  %v1044_v53 = vperm.slane %v3812_v61, 1 }
 0x2f4   : > { %1305 = vst [vmem:[#allocation1 + $0x1] ss:$9 sm:$0xff] %v1028_v32  ;;  %v2150_v32 = vmul.f32 %v2118_v34, %v2118_v34  ;;  %v2005_v20 = vpop.f32.mrf.mxu3  ;;  %v1055_v34 = vperm.slane %v3822_v35, 4 }
 0x2f5   : > { %1306 = vst [vmem:[#allocation1 + $0x2] ss:$9 sm:$0xff] %v1029_v8  ;;  %v1045_v8 = vperm.slane %v3812_v61, 2 }
 0x2f6   : > { %1307 = vst [vmem:[#allocation1 + $0x3] ss:$9 sm:$0xff] %v1030_v9  ;;  %v1046_v9 = vperm.slane %v3812_v61, 3 }
 0x2f7   : > { %1308 = vst [vmem:[#allocation1 + $0x4] ss:$9 sm:$0xff] %v1031_v62  ;;  %v2181_v62 = vadd.f32 %v2180_v36, %v2150_v32 }
 0x2f8   : > { %1309 = vst [vmem:[#allocation1 + $0x5] ss:$9 sm:$0xff] %v1032_v43  ;;  %v3847_v43 = vpop.permute.xlu0 %841 }
 0x2f9   : > { %1310 = vst [vmem:[#allocation1 + $0x6] ss:$9 sm:$0xff] %v1033_v37  ;;  %2511 = vmatmul.msk.f32.gmra.mxu2 %vm1696_vm5, %v2943_v26  ;;  %2543 = vmatmul.msk.f32.gmra.mxu3 %vm1697_vm3, %v2943_v26  ;;  %v1047_v37 = vperm.slane %v3812_v61, 4  ;;  %vm1706_vm1 = vcmp.eq.s32.totalorder %v3321_v23, %v3847_v43  ;;  %vm1707_vm2 = vcmp.eq.s32.totalorder %v3332_v29, %v3847_v43  ;;  %v1097_v11 = vperm.slane %v3847_v43, 6 }
 0x2fa   : > { %1311 = vst [vmem:[#allocation1 + $0x7] ss:$9 sm:$0xff] %v1034_v3  ;;  %v3852_v3 = vpop.permute.xlu2 %817 }
 0x2fb   : > { %vm1700_vm4 = vcmp.eq.s32.totalorder %v3321_v23, %v3852_v3  ;;  %vm1701_vm8 = vcmp.eq.s32.totalorder %v3332_v29, %v3852_v3 }
 0x2fc   : > { %v2008_v41 = vpop.f32.mrf.mxu3 }
 0x301   : > { %v3814_v19 = vld [vmem:[#allocation1] sm:$0xff]  ;;  %2512 = vmatmul.msk.f32.gmra.mxu2 %vm1698_vm6, %v2943_v26  ;;  %2544 = vmatmul.msk.f32.gmra.mxu3 %vm1699_vm7, %v2943_v26 }
 0x302   : > { %1313 = vst [vmem:[#allocation1] ss:$9 sm:$0xff] %v1035_v58  ;;  %v1048_v58 = vperm.slane %v3812_v61, 5 }
 0x303   : > { %1314 = vst [vmem:[#allocation1 + $0x1] ss:$9 sm:$0xff] %v1036_v13  ;;  %v1049_v13 = vperm.slane %v3812_v61, 6 }
 0x304   : > { %1315 = vst [vmem:[#allocation1 + $0x2] ss:$9 sm:$0xff] %v1037_v27  ;;  %v1050_v27 = vperm.slane %v3812_v61, 7  ;;  %v3865_v61 = vpop.permute.xlu2 %825 }
 0x305   : > { %1316 = vst [vmem:[#allocation1 + $0x3] ss:$9 sm:$0xff] %v1038_v18  ;;  %v1892_v18 = vpop.f32.mrf.mxu2  ;;  %vm1702_vm12 = vcmp.eq.s32.totalorder %v3321_v23, %v3865_v61  ;;  %vm1703_vm0 = vcmp.eq.s32.totalorder %v3332_v29, %v3865_v61 }
 0x306   : > { %1317 = vst [vmem:[#allocation1 + $0x4] ss:$9 sm:$0xff] %v1039_v51  ;;  %v2006_v22 = vadd.f32 %v2005_v20, %v1892_v18  ;;  %v2692_v51 = vld [vmem:[%s3087_s30 + $0x38] sm:$0xff]  ;;  %v1059_v18 = vperm.slane %v3833_v47, 0 }
 0x307   : > { %1318 = vst [vmem:[#allocation1 + $0x5] ss:$9 sm:$0xff] %v1040_v40  ;;  %v855_v40 = vpop.xlane.xlu0 %854 }
 0x308   : > { %1319 = vst [vmem:[#allocation1 + $0x6] ss:$9 sm:$0xff] %v1041_v38  ;;  %v2119_v59 = vsub.f32 %v2006_v22, %v2692_v51  ;;  %2674 = vset.pattern.permute.xlu2 %v855_v40  ;;  %v1062_v51 = vperm.slane %v3833_v47, 3  ;;  %v1064_v40 = vperm.slane %v3833_v47, 5 }
 0x309   : > { %1320 = vst [vmem:[#allocation1 + $0x7] ss:$9 sm:$0xff] %v1042_v14  ;;  %2513 = vmatmul.msk.f32.gmra.mxu2 %vm1700_vm4, %v2943_v26  ;;  %2545 = vmatmul.msk.f32.gmra.mxu3 %vm1701_vm8, %v2943_v26  ;;  %v1052_v14 = vperm.slane %v3822_v35, 1 }
 0x30a   : > { %2087 = vst [vmem:[%s3640_s24 + $0x38] sm:$0xff] %v2006_v22  ;;  %v2151_v38 = vmul.f32 %v2119_v59, %v2119_v59  ;;  %v1061_v22 = vperm.slane %v3833_v47, 2  ;;  %v1063_v59 = vperm.slane %v3833_v47, 4 }
 0x30c   : > { %v2182_v44 = vadd.f32 %v2181_v62, %v2151_v38  ;;  %v1057_v62 = vperm.slane %v3822_v35, 6  ;;  %v1067_v38 = vperm.slane %v3852_v3, 0 }
 0x30d   : > { %v1895_v36 = vpop.f32.mrf.mxu2 }
 0x30e   : > { %v2009_v33 = vadd.f32 %v2008_v41, %v1895_v36  ;;  %v1070_v36 = vperm.slane %v3852_v3, 3  ;;  %v1071_v41 = vperm.slane %v3852_v3, 4 }
 0x310   : > { %v3838_v10 = vld [vmem:[#allocation1] sm:$0xff]  ;;  %2088 = vst [vmem:[%s3640_s24 + $0x40] sm:$0xff] %v2009_v33 }
 0x311   : > { %1322 = vst [vmem:[#allocation1] ss:$9 sm:$0xff] %v1043_v30  ;;  %v326_v30 = vld [vmem:[%s3087_s30 + $0xf0] sm:$0xff]  ;;  %2514 = vmatmul.msk.f32.gmra.mxu2 %vm1702_vm12, %v2943_v26  ;;  %2546 = vmatmul.msk.f32.gmra.mxu3 %vm1703_vm0, %v2943_v26 }
 0x312   : > { %1323 = vst [vmem:[#allocation1 + $0x1] ss:$9 sm:$0xff] %v1044_v53  ;;  %v2693_v53 = vld [vmem:[%s3087_s30 + $0x40] sm:$0xff]  ;;  %466 = vmatmul.f32.gmra.mxu0 %v326_v30  ;;  %579 = vmatmul.f32.gmra.mxu1 %v326_v30  ;;  %v1076_v30 = vperm.slane %v3865_v61, 1 }
 0x313   : > { %1324 = vst [vmem:[#allocation1 + $0x2] ss:$9 sm:$0xff] %v1045_v8  ;;  %v2120_v32 = vsub.f32 %v2009_v33, %v2693_v53  ;;  %v1056_v8 = vperm.slane %v3822_v35, 5  ;;  %v1074_v33 = vperm.slane %v3852_v3, 7 }
 0x314   : > { %1325 = vst [vmem:[#allocation1 + $0x3] ss:$9 sm:$0xff] %v1046_v9  ;;  %v853_v9 = vsel %vm851_vm9, %v3321_v23, %v3332_v29 }
 0x315   : > { %1326 = vst [vmem:[#allocation1 + $0x4] ss:$9 sm:$0xff] %v1047_v37  ;;  %v2152_v37 = vmul.f32 %v2120_v32, %v2120_v32  ;;  %857 = vperm.xlu2 %2674, %v853_v9   ;;  %v1077_v32 = vperm.slane %v3865_v61, 2  ;;  %v1080_v9 = vperm.slane %v3865_v61, 5 }
 0x316   : > { %1327 = vst [vmem:[#allocation1 + $0x5] ss:$9 sm:$0xff] %v1048_v58  ;;  %v887_v58 = vpop.xlane.xlu2 %886 }
 0x317   : > { %1328 = vst [vmem:[#allocation1 + $0x6] ss:$9 sm:$0xff] %v1049_v13  ;;  %v1058_v13 = vperm.slane %v3822_v35, 7  ;;  %2678 = vset.pattern.permute.xlu1 %v887_v58  ;;  %v1060_v35 = vperm.slane %v3833_v47, 1  ;;  %v1072_v47 = vperm.slane %v3852_v3, 5 }
 0x318   : > { %1329 = vst [vmem:[#allocation1 + $0x7] ss:$9 sm:$0xff] %v1050_v27  ;;  %v3890_v27 = vadd.f32 %v2182_v44, %v2152_v37  ;;  %v1082_v37 = vperm.slane %v3865_v61, 7 }
 0x31a   : > { %469 = vmatmul.f32.gmra.mxu0 %v327_v28  ;;  %582 = vmatmul.f32.gmra.mxu1 %v327_v28 }
 0x31e   : > { %v3939_v28 = vpop.permute.xlu2 %849 }
 0x31f   : > { %v3869_v45 = vld [vmem:[#allocation1] sm:$0xff]  ;;  %889 = vperm.xlu1 %2678, %v885_v12   ;;  %vm1708_vm14 = vcmp.eq.s32.totalorder %v3321_v23, %v3939_v28  ;;  %vm1709_vm5 = vcmp.eq.s32.totalorder %v3332_v29, %v3939_v28  ;;  %v1104_v4 = vperm.slane %v3939_v28, 5  ;;  %v1105_v63 = vperm.slane %v3939_v28, 6 }
 0x320   : > { %1331 = vst [vmem:[#allocation1] ss:$9 sm:$0xff] %v1051_v54  ;;  %v1068_v54 = vperm.slane %v3852_v3, 1 }
 0x321   : > { %1332 = vst [vmem:[#allocation1 + $0x1] ss:$9 sm:$0xff] %v1052_v14  ;;  %v1069_v14 = vperm.slane %v3852_v3, 2 }
 0x322   : > { %1333 = vst [vmem:[#allocation1 + $0x2] ss:$9 sm:$0xff] %v1053_v6  ;;  %v1073_v6 = vperm.slane %v3852_v3, 6  ;;  %v1079_v3 = vperm.slane %v3865_v61, 4 }
 0x323   : > { %1334 = vst [vmem:[#allocation1 + $0x3] ss:$9 sm:$0xff] %v1054_v48  ;;  %v1075_v48 = vperm.slane %v3865_v61, 0 }
 0x324   : > { %1335 = vst [vmem:[#allocation1 + $0x4] ss:$9 sm:$0xff] %v1055_v34  ;;  %v834_v34 = vpop.permute.xlu1 %833 }
 0x325   : > { %1336 = vst [vmem:[#allocation1 + $0x5] ss:$9 sm:$0xff] %v1056_v8  ;;  %v1078_v8 = vperm.slane %v3865_v61, 3  ;;  %vm1704_vm9 = vcmp.eq.s32.totalorder %v3321_v23, %v834_v34  ;;  %vm1705_vm15 = vcmp.eq.s32.totalorder %v3332_v29, %v834_v34  ;;  %v1083_v58 = vperm.slane %v834_v34, 0 }
 0x326   : > { %1337 = vst [vmem:[#allocation1 + $0x6] ss:$9 sm:$0xff] %v1057_v62  ;;  %2515 = vmatmul.msk.f32.gmra.mxu2 %vm1704_vm9, %v2943_v26  ;;  %2547 = vmatmul.msk.f32.gmra.mxu3 %vm1705_vm15, %v2943_v26  ;;  %v1081_v62 = vperm.slane %v3865_v61, 6  ;;  %v1085_v12 = vperm.slane %v834_v34, 2 }
 0x327   : > { %1338 = vst [vmem:[#allocation1 + $0x7] ss:$9 sm:$0xff] %v1058_v13  ;;  %v1084_v13 = vperm.slane %v834_v34, 1 }
 0x32e   : > { %v3901_v20 = vld [vmem:[#allocation1] sm:$0xff]  ;;  %2516 = vmatmul.msk.f32.gmra.mxu2 %vm1706_vm1, %v2943_v26  ;;  %2548 = vmatmul.msk.f32.gmra.mxu3 %vm1707_vm2, %v2943_v26 }
 0x32f   : > { %1340 = vst [vmem:[#allocation1] ss:$9 sm:$0xff] %v1059_v18  ;;  %v1086_v18 = vperm.slane %v834_v34, 3 }
 0x330   : > { %1341 = vst [vmem:[#allocation1 + $0x1] ss:$9 sm:$0xff] %v1060_v35  ;;  %v1898_v35 = vpop.f32.mrf.mxu2 }
 0x331   : > { %1342 = vst [vmem:[#allocation1 + $0x2] ss:$9 sm:$0xff] %v1061_v22  ;;  %v2011_v22 = vpop.f32.mrf.mxu3 }
 0x332   : > { %1343 = vst [vmem:[#allocation1 + $0x3] ss:$9 sm:$0xff] %v1062_v51  ;;  %v1087_v51 = vperm.slane %v834_v34, 4 }
 0x333   : > { %1344 = vst [vmem:[#allocation1 + $0x4] ss:$9 sm:$0xff] %v1063_v59  ;;  %v2012_v59 = vadd.f32 %v2011_v22, %v1898_v35  ;;  %v861_v35 = vsel %vm859_vm10, %v3321_v23, %v3332_v29  ;;  %v1093_v22 = vperm.slane %v3847_v43, 2 }
 0x334   : > { %1345 = vst [vmem:[#allocation1 + $0x5] ss:$9 sm:$0xff] %v1064_v40  ;;  %v1088_v40 = vperm.slane %v834_v34, 5 }
 0x335   : > { %1346 = vst [vmem:[#allocation1 + $0x6] ss:$9 sm:$0xff] %v1065_v16  ;;  %v1089_v16 = vperm.slane %v834_v34, 6 }
 0x336   : > { %1347 = vst [vmem:[#allocation1 + $0x7] ss:$9 sm:$0xff] %v1066_v25  ;;  %v2694_v25 = vld [vmem:[%s3087_s30 + $0x48] sm:$0xff]  ;;  %2517 = vmatmul.msk.f32.gmra.mxu2 %vm1708_vm14, %v2943_v26  ;;  %2549 = vmatmul.msk.f32.gmra.mxu3 %vm1709_vm5, %v2943_v26 }
 0x337   : > { %2089 = vst [vmem:[%s3640_s24 + $0x48] sm:$0xff] %v2012_v59 }
 0x33d   : > { %v3911_v44 = vld [vmem:[#allocation1] sm:$0xff] }
 0x33e   : > { %1349 = vst [vmem:[#allocation1] ss:$9 sm:$0xff] %v1067_v38  ;;  %v2121_v38 = vsub.f32 %v2012_v59, %v2694_v25  ;;  %v1095_v25 = vperm.slane %v3847_v43, 4 }
 0x33f   : > { %1350 = vst [vmem:[#allocation1 + $0x1] ss:$9 sm:$0xff] %v1068_v54  ;;  %v1090_v54 = vperm.slane %v834_v34, 7  ;;  %v2944_v34 = vmov 0  }
 0x340   : > { %1351 = vst [vmem:[#allocation1 + $0x2] ss:$9 sm:$0xff] %v1069_v14  ;;  %v2153_v14 = vmul.f32 %v2121_v38, %v2121_v38  ;;  %2683 = vset.pattern.permute.xlu1 %v2944_v34  ;;  %v1096_v38 = vperm.slane %v3847_v43, 5 }
 0x341   : > { %1352 = vst [vmem:[#allocation1 + $0x3] ss:$9 sm:$0xff] %v1070_v36  ;;  %v464_v36 = vpop.f32.mrf.mxu0 }
 0x342   : > { %1353 = vst [vmem:[#allocation1 + $0x4] ss:$9 sm:$0xff] %v1071_v41  ;;  %v577_v41 = vpop.f32.mrf.mxu1 }
 0x343   : > { %1354 = vst [vmem:[#allocation1 + $0x5] ss:$9 sm:$0xff] %v1072_v47  ;;  %v2184_v47 = vadd.f32 %v3890_v27, %v2153_v14  ;;  %v1098_v14 = vperm.slane %v3847_v43, 7 }
 0x344   : > { %1355 = vst [vmem:[#allocation1 + $0x6] ss:$9 sm:$0xff] %v1073_v6  ;;  %v3952_v6 = vsub.f32 %v3113_v49, %v464_v36 }
 0x345   : > { %1356 = vst [vmem:[#allocation1 + $0x7] ss:$9 sm:$0xff] %v1074_v33  ;;  %v3955_v33 = vsub.f32 %v3115_v50, %v577_v41 }
 0x347   : > { %vm891_vm3 = vcmp.le.f32.partialorder %v3952_v6, %v3955_v33 }
 0x348   : > { %v892_v27 = vsel %vm891_vm3, %v3952_v6, %v3955_v33 }
 0x349   : > { %894 = vmin.index.xlane.f32.xlu1 %v892_v27 }
 0x34c   : > { %v3921_v53 = vld [vmem:[#allocation1] sm:$0xff] }
 0x34d   : > { %1358 = vst [vmem:[#allocation1] ss:$9 sm:$0xff] %v1075_v48  ;;  %v863_v48 = vpop.xlane.xlu1 %862 }
 0x34e   : > { %1359 = vst [vmem:[#allocation1 + $0x1] ss:$9 sm:$0xff] %v1076_v30  ;;  %v1901_v30 = vpop.f32.mrf.mxu2  ;;  %2675 = vset.pattern.permute.xlu2 %v863_v48 }
 0x34f   : > { %1360 = vst [vmem:[#allocation1 + $0x2] ss:$9 sm:$0xff] %v1077_v32  ;;  %v2014_v32 = vpop.f32.mrf.mxu3 }
 0x350   : > { %1361 = vst [vmem:[#allocation1 + $0x3] ss:$9 sm:$0xff] %v1078_v8  ;;  %v2015_v8 = vadd.f32 %v2014_v32, %v1901_v30 }
 0x351   : > { %1362 = vst [vmem:[#allocation1 + $0x4] ss:$9 sm:$0xff] %v1079_v3  ;;  %v2695_v3 = vld [vmem:[%s3087_s30 + $0x50] sm:$0xff] }
 0x352   : > { %1363 = vst [vmem:[#allocation1 + $0x5] ss:$9 sm:$0xff] %v1080_v9  ;;  %v2122_v9 = vsub.f32 %v2015_v8, %v2695_v3  ;;  %v1099_v3 = vperm.slane %v3939_v28, 0 }
 0x353   : > { %1364 = vst [vmem:[#allocation1 + $0x6] ss:$9 sm:$0xff] %v1081_v62 }
 0x354   : > { %1365 = vst [vmem:[#allocation1 + $0x7] ss:$9 sm:$0xff] %v1082_v37  ;;  %v2154_v62 = vmul.f32 %v2122_v9, %v2122_v9  ;;  %v1091_v37 = vperm.slane %v3847_v43, 0 }
 0x355   : > { %2090 = vst [vmem:[%s3640_s24 + $0x50] sm:$0xff] %v2015_v8  ;;  %v2697_v8 = vld [vmem:[%s3087_s30 + $0x60] sm:$0xff] }
 0x356   : > { %865 = vperm.xlu2 %2675, %v861_v35   ;;  %v1102_v35 = vperm.slane %v3939_v28, 3 }
 0x357   : > { %v2017_v59 = vpop.f32.mrf.mxu3 }
 0x35b   : > { %v3941_v61 = vld [vmem:[#allocation1] sm:$0xff] }
 0x35c   : > { %1367 = vst [vmem:[#allocation1] ss:$9 sm:$0xff] %v1083_v58  ;;  %v1092_v58 = vperm.slane %v3847_v43, 1 }
 0x35d   : > { %1368 = vst [vmem:[#allocation1 + $0x1] ss:$9 sm:$0xff] %v1084_v13 }
 0x35e   : > { %1369 = vst [vmem:[#allocation1 + $0x2] ss:$9 sm:$0xff] %v1085_v12  ;;  %v2185_v12 = vadd.f32 %v2184_v47, %v2154_v62 }
 0x35f   : > { %1370 = vst [vmem:[#allocation1 + $0x3] ss:$9 sm:$0xff] %v1086_v18  ;;  %v871_v18 = vpop.xlane.xlu1 %870  ;;  %v2020_v30 = vpop.f32.mrf.mxu3 }
 0x360   : > { %1371 = vst [vmem:[#allocation1 + $0x4] ss:$9 sm:$0xff] %v1087_v51  ;;  %v1904_v51 = vpop.f32.mrf.mxu2  ;;  %2676 = vset.pattern.permute.xlu2 %v871_v18  ;;  %v869_v18 = vsel %vm867_vm11, %v3321_v23, %v3332_v29 }
 0x361   : > { %1372 = vst [vmem:[#allocation1 + $0x5] ss:$9 sm:$0xff] %v1088_v40  ;;  %v1094_v40 = vperm.slane %v3847_v43, 3  ;;  %v1100_v43 = vperm.slane %v3939_v28, 1 }
 0x362   : > { %1373 = vst [vmem:[#allocation1 + $0x6] ss:$9 sm:$0xff] %v1089_v16  ;;  %v2018_v16 = vadd.f32 %v2017_v59, %v1904_v51  ;;  %v1103_v59 = vperm.slane %v3939_v28, 4  ;;  %1470 = vperm.xlu1 %2683, %v3522_v21   ;;  %v2699_v21 = vld [vmem:[%s3087_s30 + $0x70] sm:$0xff] }
 0x363   : > { %1374 = vst [vmem:[#allocation1 + $0x7] ss:$9 sm:$0xff] %v1090_v54  ;;  %v2696_v54 = vld [vmem:[%s3087_s30 + $0x58] sm:$0xff] }
 0x364   : > { %v2123_v56 = vsub.f32 %v2018_v16, %v2696_v54  ;;  %2091 = vst [vmem:[%s3640_s24 + $0x58] sm:$0xff] %v2018_v16 }
 0x366   : > { %v2155_v36 = vmul.f32 %v2123_v56, %v2123_v56 }
 0x367   : > { %v879_v47 = vpop.xlane.xlu1 %878  ;;  %v2023_v51 = vpop.f32.mrf.mxu3 }
 0x368   : > { %v2186_v41 = vadd.f32 %v2185_v12, %v2155_v36  ;;  %2677 = vset.pattern.permute.xlu0 %v879_v47  ;;  %v1907_v48 = vpop.f32.mrf.mxu2  ;;  %v877_v12 = vsel %vm875_vm13, %v3321_v23, %v3332_v29  ;;  %873 = vperm.xlu2 %2676, %v869_v18  }
 0x369   : > { %v2021_v32 = vadd.f32 %v2020_v30, %v1907_v48 }
 0x36a   : > { %v3970_v13 = vld [vmem:[#allocation1] sm:$0xff]  ;;  %1485 = vperm.xlu1 %2683, %v3692_v55  }
 0x36b   : > { %1376 = vst [vmem:[#allocation1] ss:$9 sm:$0xff] %v1091_v37  ;;  %v2124_v27 = vsub.f32 %v2021_v32, %v2697_v8  ;;  %v1101_v37 = vperm.slane %v3939_v28, 2 }
 0x36c   : > { %1377 = vst [vmem:[#allocation1 + $0x1] ss:$9 sm:$0xff] %v1092_v58 }
 0x36d   : > { %1378 = vst [vmem:[#allocation1 + $0x2] ss:$9 sm:$0xff] %v1093_v22  ;;  %v2156_v9 = vmul.f32 %v2124_v27, %v2124_v27 }
 0x36e   : > { %1379 = vst [vmem:[#allocation1 + $0x3] ss:$9 sm:$0xff] %v1094_v40 }
 0x36f   : > { %1380 = vst [vmem:[#allocation1 + $0x4] ss:$9 sm:$0xff] %v1095_v25  ;;  %v2187_v58 = vadd.f32 %v2186_v41, %v2156_v9  ;;  %v858_v16 = vpop.permute.xlu2 %857  ;;  %v1106_v25 = vperm.slane %v3939_v28, 7  ;;  %v2026_v28 = vpop.f32.mrf.mxu3 }
 0x370   : > { %1381 = vst [vmem:[#allocation1 + $0x5] ss:$9 sm:$0xff] %v1096_v38  ;;  %881 = vperm.xlu0 %2677, %v877_v12   ;;  %v1910_v22 = vpop.f32.mrf.mxu2  ;;  %vm1710_vm10 = vcmp.eq.s32.totalorder %v3321_v23, %v858_v16  ;;  %vm1711_vm11 = vcmp.eq.s32.totalorder %v3332_v29, %v858_v16  ;;  %v1108_v36 = vperm.slane %v858_v16, 1  ;;  %v1109_v47 = vperm.slane %v858_v16, 2  ;;  %v2700_v12 = vld [vmem:[%s3087_s30 + $0x78] sm:$0xff] }
 0x371   : > { %1382 = vst [vmem:[#allocation1 + $0x6] ss:$9 sm:$0xff] %v1097_v11  ;;  %v2024_v40 = vadd.f32 %v2023_v51, %v1910_v22  ;;  %2518 = vmatmul.msk.f32.gmra.mxu2 %vm1710_vm10, %v2943_v26  ;;  %2550 = vmatmul.msk.f32.gmra.mxu3 %vm1711_vm11, %v2943_v26  ;;  %v1110_v30 = vperm.slane %v858_v16, 3  ;;  %v1111_v8 = vperm.slane %v858_v16, 4  ;;  %v1112_v27 = vperm.slane %v858_v16, 5 }
 0x372   : > { %1383 = vst [vmem:[#allocation1 + $0x7] ss:$9 sm:$0xff] %v1098_v14  ;;  %v1107_v14 = vperm.slane %v858_v16, 0  ;;  %v1113_v9 = vperm.slane %v858_v16, 6  ;;  %1494 = vperm.xlu1 %2683, %v3765_v39   ;;  %v2702_v39 = vld [vmem:[%s3087_s30 + $0x88] sm:$0xff]  ;;  %vm1565_vm10 = vcmask 130112  }
 0x373   : > { %2092 = vst [vmem:[%s3640_s24 + $0x60] sm:$0xff] %v2021_v32  ;;  %v2125_v31 = vsub.f32 %v2024_v40, %v2698_v15  ;;  %vm1569_vm11 = vcmask 195712  }
 0x374   : > { %2093 = vst [vmem:[%s3640_s24 + $0x68] sm:$0xff] %v2024_v40 }
 0x375   : > { %v2157_v38 = vmul.f32 %v2125_v31, %v2125_v31 }
 0x377   : > { %v2188_v54 = vadd.f32 %v2187_v58, %v2157_v38  ;;  %v1114_v58 = vperm.slane %v858_v16, 7 }
 0x378   : > { %v1913_v56 = vpop.f32.mrf.mxu2 }
 0x379   : > { %v3989_v62 = vld [vmem:[#allocation1] sm:$0xff]  ;;  %v2027_v11 = vadd.f32 %v2026_v28, %v1913_v56 }
 0x37a   : > { %1385 = vst [vmem:[#allocation1] ss:$9 sm:$0xff] %v1099_v3  ;;  %1503 = vperm.xlu1 %2683, %v3798_v7  }
 0x37b   : > { %1386 = vst [vmem:[#allocation1 + $0x1] ss:$9 sm:$0xff] %v1100_v43  ;;  %v2126_v41 = vsub.f32 %v2027_v11, %v2699_v21 }
 0x37c   : > { %1387 = vst [vmem:[#allocation1 + $0x2] ss:$9 sm:$0xff] %v1101_v37  ;;  %v2029_v37 = vpop.f32.mrf.mxu3 }
 0x37d   : > { %1388 = vst [vmem:[#allocation1 + $0x3] ss:$9 sm:$0xff] %v1102_v35  ;;  %v2158_v32 = vmul.f32 %v2126_v41, %v2126_v41 }
 0x37e   : > { %1389 = vst [vmem:[#allocation1 + $0x4] ss:$9 sm:$0xff] %v1103_v59 }
 0x37f   : > { %1390 = vst [vmem:[#allocation1 + $0x5] ss:$9 sm:$0xff] %v1104_v4  ;;  %v2189_v3 = vadd.f32 %v2188_v54, %v2158_v32  ;;  %v2701_v4 = vld [vmem:[%s3087_s30 + $0x80] sm:$0xff] }
 0x380   : > { %1391 = vst [vmem:[#allocation1 + $0x6] ss:$9 sm:$0xff] %v1105_v63  ;;  %v1916_v43 = vpop.f32.mrf.mxu2 }
 0x381   : > { %1392 = vst [vmem:[#allocation1 + $0x7] ss:$9 sm:$0xff] %v1106_v25  ;;  %v2030_v55 = vadd.f32 %v2029_v37, %v1916_v43 }
 0x382   : > { %2094 = vst [vmem:[%s3640_s24 + $0x70] sm:$0xff] %v2027_v11  ;;  %1512 = vperm.xlu1 %2683, %v3838_v10  }
 0x383   : > { %v2127_v18 = vsub.f32 %v2030_v55, %v2700_v12  ;;  %2095 = vst [vmem:[%s3640_s24 + $0x78] sm:$0xff] %v2030_v55 }
 0x384   : > { %v2032_v59 = vpop.f32.mrf.mxu3 }
 0x385   : > { %v2159_v35 = vmul.f32 %v2127_v18, %v2127_v18 }
 0x387   : > { %v2190_v22 = vadd.f32 %v2189_v3, %v2159_v35 }
 0x388   : > { %v4017_v48 = vld [vmem:[#allocation1] sm:$0xff]  ;;  %v1919_v51 = vpop.f32.mrf.mxu2 }
 0x389   : > { %1394 = vst [vmem:[#allocation1] ss:$9 sm:$0xff] %v1107_v14  ;;  %v2033_v40 = vadd.f32 %v2032_v59, %v1919_v51 }
 0x38a   : > { %1395 = vst [vmem:[#allocation1 + $0x1] ss:$9 sm:$0xff] %v1108_v36  ;;  %1521 = vperm.xlu1 %2683, %v3911_v44  }
 0x38b   : > { %1396 = vst [vmem:[#allocation1 + $0x2] ss:$9 sm:$0xff] %v1109_v47  ;;  %v2128_v63 = vsub.f32 %v2033_v40, %v2701_v4  ;;  %v2705_v4 = vld [vmem:[%s3087_s30 + $0xa0] sm:$0xff] }
 0x38c   : > { %1397 = vst [vmem:[#allocation1 + $0x3] ss:$9 sm:$0xff] %v1110_v30  ;;  %v2035_v25 = vpop.f32.mrf.mxu3  ;;  %v2703_v30 = vld [vmem:[%s3087_s30 + $0x90] sm:$0xff] }
 0x38d   : > { %1398 = vst [vmem:[#allocation1 + $0x4] ss:$9 sm:$0xff] %v1111_v8  ;;  %v2160_v15 = vmul.f32 %v2128_v63, %v2128_v63 }
 0x38e   : > { %1399 = vst [vmem:[#allocation1 + $0x5] ss:$9 sm:$0xff] %v1112_v27 }
 0x38f   : > { %1400 = vst [vmem:[#allocation1 + $0x6] ss:$9 sm:$0xff] %v1113_v9  ;;  %v2191_v31 = vadd.f32 %v2190_v22, %v2160_v15  ;;  %v580_v56 = vpop.f32.mrf.mxu1  ;;  %v467_v14 = vpop.f32.mrf.mxu0 }
 0x390   : > { %1401 = vst [vmem:[#allocation1 + $0x7] ss:$9 sm:$0xff] %v1114_v58  ;;  %v1922_v16 = vpop.f32.mrf.mxu2  ;;  %v4029_v11 = vsub.f32 %v3115_v50, %v580_v56  ;;  %v4032_v7 = vsub.f32 %v3113_v49, %v467_v14 }
 0x391   : > { %2096 = vst [vmem:[%s3640_s24 + $0x80] sm:$0xff] %v2033_v40  ;;  %v2036_v38 = vadd.f32 %v2035_v25, %v1922_v16 }
 0x392   : > { %vm899_vm13 = vcmp.le.f32.partialorder %v4032_v7, %v4029_v11  ;;  %1530 = vperm.xlu1 %2683, %v3970_v13  }
 0x393   : > { %2097 = vst [vmem:[%s3640_s24 + $0x88] sm:$0xff] %v2036_v38  ;;  %v2129_v54 = vsub.f32 %v2036_v38, %v2702_v39  ;;  %v900_v10 = vsel %vm899_vm13, %v4032_v7, %v4029_v11 }
 0x394   : > { %v2038_v41 = vpop.f32.mrf.mxu3  ;;  %902 = vmin.index.xlane.f32.xlu2 %v900_v10  ;;  %v2706_v10 = vld [vmem:[%s3087_s30 + $0xa8] sm:$0xff] }
 0x395   : > { %v2161_v28 = vmul.f32 %v2129_v54, %v2129_v54 }
 0x397   : > { %v2192_v36 = vadd.f32 %v2191_v31, %v2161_v28  ;;  %v583_v27 = vpop.f32.mrf.mxu1  ;;  %v470_v3 = vpop.f32.mrf.mxu0  ;;  %v1402_v40 = vld [vmem:[#allocation1] sm:$0xff] }
 0x398   : > { %v1925_v21 = vpop.f32.mrf.mxu2  ;;  %v4045_v9 = vsub.f32 %v3115_v50, %v583_v27  ;;  %v4048_v43 = vsub.f32 %v3113_v49, %v470_v3  ;;  %v2704_v50 = vld [vmem:[%s3087_s30 + $0x98] sm:$0xff] }
 0x399   : > { %v2039_v47 = vadd.f32 %v2038_v41, %v1925_v21 }
 0x39a   : > { %vm907_vm6 = vcmp.le.f32.partialorder %v4048_v43, %v4045_v9  ;;  %1539 = vperm.xlu1 %2683, %v1402_v40   ;;  %v2707_v40 = vld [vmem:[%s3087_s30 + $0xb0] sm:$0xff] }
 0x39b   : > { %2098 = vst [vmem:[%s3640_s24 + $0x90] sm:$0xff] %v2039_v47  ;;  %v2130_v32 = vsub.f32 %v2039_v47, %v2703_v30  ;;  %v908_v44 = vsel %vm907_vm6, %v4048_v43, %v4045_v9 }
 0x39c   : > { %v2041_v55 = vpop.f32.mrf.mxu3  ;;  %910 = vmin.index.xlane.f32.xlu2 %v908_v44 }
 0x39d   : > { %v2162_v8 = vmul.f32 %v2130_v32, %v2130_v32 }
 0x39f   : > { %v2193_v37 = vadd.f32 %v2192_v36, %v2162_v8  ;;  %v4066_v36 = vpop.permute.xlu1 %889 }
 0x3a0   : > { %v1928_v58 = vpop.f32.mrf.mxu2  ;;  %vm1718_vm15 = vcmp.eq.s32.totalorder %v3321_v23, %v4066_v36  ;;  %vm1719_vm1 = vcmp.eq.s32.totalorder %v3332_v29, %v4066_v36 }
 0x3a1   : > { %v2042_v12 = vadd.f32 %v2041_v55, %v1928_v58 }
 0x3a3   : > { %2099 = vst [vmem:[%s3640_s24 + $0x98] sm:$0xff] %v2042_v12  ;;  %v2131_v49 = vsub.f32 %v2042_v12, %v2704_v50 }
 0x3a4   : > { %v2044_v51 = vpop.f32.mrf.mxu3 }
 0x3a5   : > { %v2163_v18 = vmul.f32 %v2131_v49, %v2131_v49 }
 0x3a7   : > { %v2194_v35 = vadd.f32 %v2193_v37, %v2163_v18 }
 0x3a8   : > { %v1931_v22 = vpop.f32.mrf.mxu2 }
 0x3a9   : > { %v2045_v59 = vadd.f32 %v2044_v51, %v1931_v22 }
 0x3ab   : > { %2100 = vst [vmem:[%s3640_s24 + $0xa0] sm:$0xff] %v2045_v59  ;;  %v2132_v63 = vsub.f32 %v2045_v59, %v2705_v4 }
 0x3ac   : > { %v2047_v41 = vpop.f32.mrf.mxu3 }
 0x3ad   : > { %v2164_v15 = vmul.f32 %v2132_v63, %v2132_v63 }
 0x3af   : > { %v2195_v31 = vadd.f32 %v2194_v35, %v2164_v15 }
 0x3b0   : > { %v866_v16 = vpop.permute.xlu2 %865  ;;  %v1934_v21 = vpop.f32.mrf.mxu2 }
 0x3b1   : > { %v1115_v25 = vperm.slane %v866_v16, 0  ;;  %v1116_v38 = vperm.slane %v866_v16, 1  ;;  %v1117_v39 = vperm.slane %v866_v16, 2  ;;  %v1118_v54 = vperm.slane %v866_v16, 3 }
 0x3b2   : > { %v1119_v56 = vperm.slane %v866_v16, 4  ;;  %vm1712_vm7 = vcmp.eq.s32.totalorder %v3321_v23, %v866_v16  ;;  %vm1713_vm4 = vcmp.eq.s32.totalorder %v3332_v29, %v866_v16  ;;  %v1120_v13 = vperm.slane %v866_v16, 5 }
 0x3b3   : > { %1403 = vst [vmem:[#allocation1] ss:$9 sm:$0xff] %v1115_v25  ;;  %2519 = vmatmul.msk.f32.gmra.mxu2 %vm1712_vm7, %v2943_v26  ;;  %2551 = vmatmul.msk.f32.gmra.mxu3 %vm1713_vm4, %v2943_v26  ;;  %v1121_v28 = vperm.slane %v866_v16, 6  ;;  %v1122_v14 = vperm.slane %v866_v16, 7  ;;  %v2048_v47 = vadd.f32 %v2047_v41, %v1934_v21  ;;  %vm1573_vm7 = vcmask 261312  }
 0x3b4   : > { %1404 = vst [vmem:[#allocation1 + $0x1] ss:$9 sm:$0xff] %v1116_v38  ;;  %v2050_v18 = vpop.f32.mrf.mxu3  ;;  %vm1577_vm4 = vcmask 326912  }
 0x3b5   : > { %1405 = vst [vmem:[#allocation1 + $0x2] ss:$9 sm:$0xff] %v1117_v39  ;;  %v2133_v30 = vsub.f32 %v2048_v47, %v2706_v10  ;;  %v2708_v39 = vld [vmem:[%s3087_s30 + $0xb8] sm:$0xff] }
 0x3b6   : > { %1406 = vst [vmem:[#allocation1 + $0x3] ss:$9 sm:$0xff] %v1118_v54 }
 0x3b7   : > { %1407 = vst [vmem:[#allocation1 + $0x4] ss:$9 sm:$0xff] %v1119_v56  ;;  %v2165_v37 = vmul.f32 %v2133_v30, %v2133_v30 }
 0x3b8   : > { %1408 = vst [vmem:[#allocation1 + $0x5] ss:$9 sm:$0xff] %v1120_v13  ;;  %v1937_v49 = vpop.f32.mrf.mxu2 }
 0x3b9   : > { %1409 = vst [vmem:[#allocation1 + $0x6] ss:$9 sm:$0xff] %v1121_v28  ;;  %v2196_v12 = vadd.f32 %v2195_v31, %v2165_v37  ;;  %v2051_v22 = vadd.f32 %v2050_v18, %v1937_v49  ;;  %v893_v31 = vsel %vm891_vm3, %v3321_v23, %v3332_v29  ;;  %v1141_v37 = vperm.slane %v4066_v36, 2 }
 0x3ba   : > { %1410 = vst [vmem:[#allocation1 + $0x7] ss:$9 sm:$0xff] %v1122_v14  ;;  %v1146_v49 = vperm.slane %v4066_v36, 7 }
 0x3bb   : > { %2101 = vst [vmem:[%s3640_s24 + $0xa8] sm:$0xff] %v2048_v47  ;;  %v2134_v4 = vsub.f32 %v2051_v22, %v2707_v40 }
 0x3bc   : > { %v895_v50 = vpop.xlane.xlu1 %894  ;;  %2102 = vst [vmem:[%s3640_s24 + $0xb0] sm:$0xff] %v2051_v22  ;;  %v2053_v25 = vpop.f32.mrf.mxu3 }
 0x3bd   : > { %2679 = vset.pattern.permute.xlu0 %v895_v50  ;;  %v2166_v63 = vmul.f32 %v2134_v4, %v2134_v4  ;;  %v1145_v50 = vperm.slane %v4066_v36, 6 }
 0x3bf   : > { %v2197_v15 = vadd.f32 %v2196_v12, %v2166_v63  ;;  %v1144_v12 = vperm.slane %v4066_v36, 5 }
 0x3c0   : > { %v1940_v16 = vpop.f32.mrf.mxu2 }
 0x3c1   : > { %v4070_v58 = vld [vmem:[#allocation1] sm:$0xff]  ;;  %v2054_v38 = vadd.f32 %v2053_v25, %v1940_v16 }
 0x3c2   : > { %v874_v32 = vpop.permute.xlu2 %873 }
 0x3c3   : > { %v1123_v8 = vperm.slane %v874_v32, 0  ;;  %v1124_v27 = vperm.slane %v874_v32, 1  ;;  %v1125_v3 = vperm.slane %v874_v32, 2  ;;  %v1126_v55 = vperm.slane %v874_v32, 3  ;;  %2103 = vst [vmem:[%s3640_s24 + $0xb8] sm:$0xff] %v2054_v38 }
 0x3c4   : > { %v1127_v44 = vperm.slane %v874_v32, 4  ;;  %vm1714_vm8 = vcmp.eq.s32.totalorder %v3321_v23, %v874_v32  ;;  %vm1715_vm12 = vcmp.eq.s32.totalorder %v3332_v29, %v874_v32  ;;  %v1128_v35 = vperm.slane %v874_v32, 5 }
 0x3c5   : > { %1412 = vst [vmem:[#allocation1] ss:$9 sm:$0xff] %v1123_v8  ;;  %2520 = vmatmul.msk.f32.gmra.mxu2 %vm1714_vm8, %v2943_v26  ;;  %2552 = vmatmul.msk.f32.gmra.mxu3 %vm1715_vm12, %v2943_v26  ;;  %v1129_v51 = vperm.slane %v874_v32, 6  ;;  %v1130_v59 = vperm.slane %v874_v32, 7  ;;  %v2135_v54 = vsub.f32 %v2054_v38, %v2708_v39  ;;  %v1139_v8 = vperm.slane %v4066_v36, 0 }
 0x3c6   : > { %1413 = vst [vmem:[#allocation1 + $0x1] ss:$9 sm:$0xff] %v1124_v27  ;;  %897 = vperm.xlu0 %2679, %v893_v31   ;;  %v1140_v27 = vperm.slane %v4066_v36, 1  ;;  %v909_v31 = vsel %vm907_vm6, %v3321_v23, %v3332_v29  ;;  %vm1581_vm8 = vcmask 392512   ;;  %vm1585_vm12 = vcmask 458112  }
 0x3c7   : > { %1414 = vst [vmem:[#allocation1 + $0x2] ss:$9 sm:$0xff] %v1125_v3  ;;  %v2167_v56 = vmul.f32 %v2135_v54, %v2135_v54  ;;  %v2711_v54 = vld [vmem:[%s3087_s30 + $0xd0] sm:$0xff] }
 0x3c8   : > { %1415 = vst [vmem:[#allocation1 + $0x3] ss:$9 sm:$0xff] %v1126_v55  ;;  %v1142_v55 = vperm.slane %v4066_v36, 3 }
 0x3c9   : > { %1416 = vst [vmem:[#allocation1 + $0x4] ss:$9 sm:$0xff] %v1127_v44  ;;  %v2198_v13 = vadd.f32 %v2197_v15, %v2167_v56  ;;  %v1143_v44 = vperm.slane %v4066_v36, 4  ;;  %v901_v36 = vsel %vm899_vm13, %v3321_v23, %v3332_v29 }
 0x3ca   : > { %1417 = vst [vmem:[#allocation1 + $0x5] ss:$9 sm:$0xff] %v1128_v35 }
 0x3cb   : > { %1418 = vst [vmem:[#allocation1 + $0x6] ss:$9 sm:$0xff] %v1129_v51  ;;  %v2709_v51 = vld [vmem:[%s3087_s30 + $0xc0] sm:$0xff] }
 0x3cc   : > { %1419 = vst [vmem:[#allocation1 + $0x7] ss:$9 sm:$0xff] %v1130_v59 }
 0x3d3   : > { %v4085_v47 = vld [vmem:[#allocation1] sm:$0xff] }
 0x3e2   : > { %v882_v28 = vpop.permute.xlu0 %881 }
 0x3e3   : > { %v1131_v14 = vperm.slane %v882_v28, 0  ;;  %v1132_v21 = vperm.slane %v882_v28, 1  ;;  %v1133_v41 = vperm.slane %v882_v28, 2  ;;  %v1134_v10 = vperm.slane %v882_v28, 3 }
 0x3e4   : > { %v1135_v30 = vperm.slane %v882_v28, 4  ;;  %vm1716_vm0 = vcmp.eq.s32.totalorder %v3321_v23, %v882_v28  ;;  %vm1717_vm9 = vcmp.eq.s32.totalorder %v3332_v29, %v882_v28  ;;  %v1136_v6 = vperm.slane %v882_v28, 5 }
 0x3e5   : > { %1421 = vst [vmem:[#allocation1] ss:$9 sm:$0xff] %v1131_v14  ;;  %2521 = vmatmul.msk.f32.gmra.mxu2 %vm1716_vm0, %v2943_v26  ;;  %2553 = vmatmul.msk.f32.gmra.mxu3 %vm1717_vm9, %v2943_v26  ;;  %v1137_v33 = vperm.slane %v882_v28, 6  ;;  %v1138_v32 = vperm.slane %v882_v28, 7  ;;  %vm1589_vm0 = vcmask 523712   ;;  %vm1593_vm9 = vcmask 589312  }
 0x3e6   : > { %1422 = vst [vmem:[#allocation1 + $0x1] ss:$9 sm:$0xff] %v1132_v21  ;;  %v2712_v21 = vld [vmem:[%s3087_s30 + $0xd8] sm:$0xff] }
 0x3e7   : > { %1423 = vst [vmem:[#allocation1 + $0x2] ss:$9 sm:$0xff] %v1133_v41 }
 0x3e8   : > { %1424 = vst [vmem:[#allocation1 + $0x3] ss:$9 sm:$0xff] %v1134_v10 }
 0x3e9   : > { %1425 = vst [vmem:[#allocation1 + $0x4] ss:$9 sm:$0xff] %v1135_v30 }
 0x3ea   : > { %1426 = vst [vmem:[#allocation1 + $0x5] ss:$9 sm:$0xff] %v1136_v6 }
 0x3eb   : > { %1427 = vst [vmem:[#allocation1 + $0x6] ss:$9 sm:$0xff] %v1137_v33 }
 0x3ec   : > { %1428 = vst [vmem:[#allocation1 + $0x7] ss:$9 sm:$0xff] %v1138_v32 }
 0x3ed   : > { %2522 = vmatmul.msk.f32.gmra.mxu2 %vm1718_vm15, %v2943_v26  ;;  %2554 = vmatmul.msk.f32.gmra.mxu3 %vm1719_vm1, %v2943_v26  ;;  %vm1597_vm15 = vcmask 654912   ;;  %vm1601_vm1 = vcmask 720512  }
 0x3f3   : > { %v1429_v3 = vld [vmem:[#allocation1] sm:$0xff] }
 0x3f4   : > { %1548 = vperm.xlu1 %2683, %v1429_v3   ;;  %1430 = vst [vmem:[#allocation1] ss:$9 sm:$0xff] %v1139_v8  ;;  %v1943_v18 = vpop.f32.mrf.mxu2  ;;  %v2056_v35 = vpop.f32.mrf.mxu3 }
 0x3f5   : > { %1431 = vst [vmem:[#allocation1 + $0x1] ss:$9 sm:$0xff] %v1140_v27  ;;  %v2057_v22 = vadd.f32 %v2056_v35, %v1943_v18  ;;  %v1471_v35 = vpop.permute.xlu1 %1470 }
 0x3f6   : > { %1432 = vst [vmem:[#allocation1 + $0x2] ss:$9 sm:$0xff] %v1141_v37 }
 0x3f7   : > { %1433 = vst [vmem:[#allocation1 + $0x3] ss:$9 sm:$0xff] %v1142_v55  ;;  %v2136_v59 = vsub.f32 %v2057_v22, %v2709_v51  ;;  %v4160_v51 = vadd.s32 4294967280, %v3321_v23 }
 0x3f8   : > { %1434 = vst [vmem:[#allocation1 + $0x4] ss:$9 sm:$0xff] %v1143_v44 }
 0x3f9   : > { %1435 = vst [vmem:[#allocation1 + $0x5] ss:$9 sm:$0xff] %v1144_v12  ;;  %v2168_v40 = vmul.f32 %v2136_v59, %v2136_v59 }
 0x3fa   : > { %1436 = vst [vmem:[#allocation1 + $0x6] ss:$9 sm:$0xff] %v1145_v50 }
 0x3fb   : > { %1437 = vst [vmem:[#allocation1 + $0x7] ss:$9 sm:$0xff] %v1146_v49  ;;  %v2199_v4 = vadd.f32 %v2198_v13, %v2168_v40  ;;  %v4157_v49 = vadd.s32 4294967288, %v3321_v23 }
 0x3fc   : > { %2104 = vst [vmem:[%s3640_s24 + $0xc0] sm:$0xff] %v2057_v22 }
 0x3fd   : > { %v1564_v40 = vperm.slane %v1471_v35, %v4157_v49 }
 0x407   : > { %v903_v63 = vpop.xlane.xlu2 %902 }
 0x408   : > { %2680 = vset.pattern.permute.xlu0 %v903_v63 }
 0x40f   : > { %v911_v15 = vpop.xlane.xlu2 %910 }
 0x410   : > { %905 = vperm.xlu0 %2680, %v901_v36   ;;  %2681 = vset.pattern.permute.xlu2 %v911_v15 }
 0x418   : > { %2682 = vset.pattern.permute.xlu0 %v2944_v34  ;;  %913 = vperm.xlu2 %2681, %v909_v31   ;;  %v4172_v31 = vadd.s32 4294967272, %v3321_v23 }
 0x419   : > { %1467 = vperm.xlu0 %2682, %v3505_v0  }
 0x420   : > { %2684 = vset.pattern.permute.xlu2 %v2944_v34  ;;  %v2710_v34 = vld [vmem:[%s3087_s30 + $0xc8] sm:$0xff] }
 0x421   : > { %1476 = vperm.xlu0 %2682, %v3590_v1   ;;  %1473 = vperm.xlu2 %2684, %v3569_v24  }
 0x429   : > { %1482 = vperm.xlu0 %2682, %v3644_v2   ;;  %1479 = vperm.xlu2 %2684, %v3614_v57  }
 0x431   : > { %1491 = vperm.xlu0 %2682, %v3749_v60   ;;  %1488 = vperm.xlu2 %2684, %v3727_v5  }
 0x436   : > { %v1946_v11 = vpop.f32.mrf.mxu2  ;;  %v2059_v0 = vpop.f32.mrf.mxu3 }
 0x437   : > { %v2060_v7 = vadd.f32 %v2059_v0, %v1946_v11 }
 0x438   : > { %v898_v57 = vpop.permute.xlu0 %897 }
 0x439   : > { %1500 = vperm.xlu0 %2682, %v3783_v42   ;;  %1497 = vperm.xlu2 %2684, %v3776_v46   ;;  %2105 = vst [vmem:[%s3640_s24 + $0xc8] sm:$0xff] %v2060_v7  ;;  %v2137_v1 = vsub.f32 %v2060_v7, %v2710_v34  ;;  %v1147_v2 = vperm.slane %v898_v57, 0  ;;  %v1148_v60 = vperm.slane %v898_v57, 1  ;;  %v1149_v5 = vperm.slane %v898_v57, 2  ;;  %v1438_v42 = vld [vmem:[#allocation1] sm:$0xff] }
 0x43a   : > { %v1150_v43 = vperm.slane %v898_v57, 3  ;;  %v1151_v16 = vperm.slane %v898_v57, 4  ;;  %vm1720_vm2 = vcmp.eq.s32.totalorder %v3321_v23, %v898_v57  ;;  %vm1721_vm14 = vcmp.eq.s32.totalorder %v3332_v29, %v898_v57 }
 0x43b   : > { %v2169_v9 = vmul.f32 %v2137_v1, %v2137_v1  ;;  %1439 = vst [vmem:[#allocation1] ss:$9 sm:$0xff] %v1147_v2  ;;  %v1152_v46 = vperm.slane %v898_v57, 5  ;;  %2523 = vmatmul.msk.f32.gmra.mxu2 %vm1720_vm2, %v2943_v26  ;;  %2555 = vmatmul.msk.f32.gmra.mxu3 %vm1721_vm14, %v2943_v26  ;;  %vm1605_vm2 = vcmask 786112   ;;  %vm1609_vm14 = vcmask 851712  }
 0x43c   : > { %1440 = vst [vmem:[#allocation1 + $0x1] ss:$9 sm:$0xff] %v1148_v60 }
 0x43d   : > { %v2200_v24 = vadd.f32 %v2199_v4, %v2169_v9  ;;  %1441 = vst [vmem:[#allocation1 + $0x2] ss:$9 sm:$0xff] %v1149_v5 }
 0x43e   : > { %1442 = vst [vmem:[#allocation1 + $0x3] ss:$9 sm:$0xff] %v1150_v43 }
 0x43f   : > { %1443 = vst [vmem:[#allocation1 + $0x4] ss:$9 sm:$0xff] %v1151_v16 }
 0x440   : > { %1444 = vst [vmem:[#allocation1 + $0x5] ss:$9 sm:$0xff] %v1152_v46  ;;  %v1486_v46 = vpop.permute.xlu1 %1485 }
 0x441   : > { %1509 = vperm.xlu0 %2682, %v3814_v19   ;;  %1506 = vperm.xlu2 %2684, %v3810_v52   ;;  %v1153_v52 = vperm.slane %v898_v57, 6  ;;  %v1154_v19 = vperm.slane %v898_v57, 7 }
 0x443   : > { %1445 = vst [vmem:[#allocation1 + $0x6] ss:$9 sm:$0xff] %v1153_v52 }
 0x444   : > { %1446 = vst [vmem:[#allocation1 + $0x7] ss:$9 sm:$0xff] %v1154_v19 }
 0x448   : > { %v1949_v25 = vpop.f32.mrf.mxu2  ;;  %v2062_v38 = vpop.f32.mrf.mxu3 }
 0x449   : > { %1518 = vperm.xlu0 %2682, %v3901_v20   ;;  %1515 = vperm.xlu2 %2684, %v3869_v45   ;;  %v2063_v39 = vadd.f32 %v2062_v38, %v1949_v25  ;;  %v4182_v25 = vpop.permute.xlu1 %1494 }
 0x44b   : > { %2106 = vst [vmem:[%s3640_s24 + $0xd0] sm:$0xff] %v2063_v39  ;;  %v2138_v56 = vsub.f32 %v2063_v39, %v2711_v54 }
 0x44d   : > { %v2170_v13 = vmul.f32 %v2138_v56, %v2138_v56 }
 0x44f   : > { %v2201_v28 = vadd.f32 %v2200_v24, %v2170_v13 }
 0x451   : > { %1527 = vperm.xlu0 %2682, %v3941_v61   ;;  %1524 = vperm.xlu2 %2684, %v3921_v53   ;;  %v1447_v61 = vld [vmem:[#allocation1] sm:$0xff] }
 0x459   : > { %1536 = vperm.xlu0 %2682, %v4017_v48   ;;  %1533 = vperm.xlu2 %2684, %v3989_v62  }
 0x461   : > { %1545 = vperm.xlu0 %2682, %v4085_v47   ;;  %1542 = vperm.xlu2 %2684, %v4070_v58   ;;  %v2713_v47 = vld [vmem:[%s3087_s30 + $0xe0] sm:$0xff] }
 0x468   : > { %v1952_v45 = vpop.f32.mrf.mxu2  ;;  %v2065_v20 = vpop.f32.mrf.mxu3 }
 0x469   : > { %v2066_v14 = vadd.f32 %v2065_v20, %v1952_v45  ;;  %1554 = vperm.xlu0 %2682, %v1447_v61   ;;  %1551 = vperm.xlu2 %2684, %v1438_v42   ;;  %v4190_v20 = vpop.permute.xlu1 %1503 }
 0x46b   : > { %2107 = vst [vmem:[%s3640_s24 + $0xd8] sm:$0xff] %v2066_v14  ;;  %v2139_v41 = vsub.f32 %v2066_v14, %v2712_v21 }
 0x46d   : > { %v2171_v10 = vmul.f32 %v2139_v41, %v2139_v41 }
 0x46f   : > { %v2202_v30 = vadd.f32 %v2201_v28, %v2171_v10  ;;  %v2714_v28 = vld [vmem:[%s3087_s30 + $0xe8] sm:$0xff] }
 0x470   : > { %v1955_v53 = vpop.f32.mrf.mxu2  ;;  %v2068_v48 = vpop.f32.mrf.mxu3 }
 0x471   : > { %v2069_v62 = vadd.f32 %v2068_v48, %v1955_v53  ;;  %v4197_v61 = vpop.permute.xlu1 %1512 }
 0x472   : > { %v914_v32 = vpop.permute.xlu2 %913 }
 0x473   : > { %2108 = vst [vmem:[%s3640_s24 + $0xe0] sm:$0xff] %v2069_v62  ;;  %v2140_v6 = vsub.f32 %v2069_v62, %v2713_v47  ;;  %vm1724_vm13 = vcmp.eq.s32.totalorder %v3321_v23, %v914_v32  ;;  %vm1725_vm6 = vcmp.eq.s32.totalorder %v3332_v29, %v914_v32  ;;  %v1163_v11 = vperm.slane %v914_v32, 0 }
 0x474   : > { %v1164_v0 = vperm.slane %v914_v32, 1  ;;  %v1165_v1 = vperm.slane %v914_v32, 2  ;;  %v1166_v9 = vperm.slane %v914_v32, 3  ;;  %v1167_v24 = vperm.slane %v914_v32, 4 }
 0x475   : > { %v2172_v33 = vmul.f32 %v2140_v6, %v2140_v6  ;;  %v1168_v57 = vperm.slane %v914_v32, 5  ;;  %v1169_v2 = vperm.slane %v914_v32, 6  ;;  %v1170_v60 = vperm.slane %v914_v32, 7 }
 0x477   : > { %v4150_v58 = vadd.f32 %v2202_v30, %v2172_v33 }
 0x479   : > { %v1522_v48 = vpop.permute.xlu1 %1521 }
 0x47b   : > { %v1474_v22 = vpop.permute.xlu2 %1473 }
 0x47c   : > { %v1568_v63 = vperm.slane %v1474_v22, %v4160_v51 }
 0x481   : > { %v1531_v32 = vpop.permute.xlu1 %1530 }
 0x482   : > { %v906_v8 = vpop.permute.xlu0 %905 }
 0x483   : > { %v1155_v27 = vperm.slane %v906_v8, 0  ;;  %v1156_v3 = vperm.slane %v906_v8, 1  ;;  %v1157_v37 = vperm.slane %v906_v8, 2  ;;  %v1158_v55 = vperm.slane %v906_v8, 3  ;;  %v1480_v43 = vpop.permute.xlu2 %1479 }
 0x484   : > { %v1159_v44 = vperm.slane %v906_v8, 4  ;;  %vm1722_vm5 = vcmp.eq.s32.totalorder %v3321_v23, %v906_v8  ;;  %vm1723_vm3 = vcmp.eq.s32.totalorder %v3332_v29, %v906_v8  ;;  %v1160_v12 = vperm.slane %v906_v8, 5 }
 0x485   : > { %1448 = vst [vmem:[#allocation1] ss:$9 sm:$0xff] %v1155_v27  ;;  %2524 = vmatmul.msk.f32.gmra.mxu2 %vm1722_vm5, %v2943_v26  ;;  %2556 = vmatmul.msk.f32.gmra.mxu3 %vm1723_vm3, %v2943_v26  ;;  %v1161_v50 = vperm.slane %v906_v8, 6  ;;  %v1162_v18 = vperm.slane %v906_v8, 7  ;;  %v1626_v27 = vperm.slane %v1522_v48, %v4160_v51  ;;  %vm1613_vm5 = vcmask 917312  }
 0x486   : > { %1449 = vst [vmem:[#allocation1 + $0x1] ss:$9 sm:$0xff] %v1156_v3  ;;  %vm1617_vm3 = vcmask 982912  }
 0x487   : > { %1450 = vst [vmem:[#allocation1 + $0x2] ss:$9 sm:$0xff] %v1157_v37  ;;  %v1579_v37 = vadd.s32 4294967256, %v3321_v23 }
 0x488   : > { %1451 = vst [vmem:[#allocation1 + $0x3] ss:$9 sm:$0xff] %v1158_v55 }
 0x489   : > { %1452 = vst [vmem:[#allocation1 + $0x4] ss:$9 sm:$0xff] %v1159_v44 }
 0x48a   : > { %1453 = vst [vmem:[#allocation1 + $0x5] ss:$9 sm:$0xff] %v1160_v12 }
 0x48b   : > { %1454 = vst [vmem:[#allocation1 + $0x6] ss:$9 sm:$0xff] %v1161_v50  ;;  %v1468_v59 = vpop.permute.xlu0 %1467  ;;  %v4176_v16 = vpop.permute.xlu2 %1488 }
 0x48c   : > { %1455 = vst [vmem:[#allocation1 + $0x7] ss:$9 sm:$0xff] %v1162_v18  ;;  %v1562_v4 = vperm.slane %v1468_v59, %v3321_v23 }
 0x48d   : > { %2525 = vmatmul.msk.f32.gmra.mxu2 %vm1724_vm13, %v2943_v26  ;;  %2557 = vmatmul.msk.f32.gmra.mxu3 %vm1725_vm6, %v2943_v26  ;;  %vm1659_vm13 = vcmp.lt.s32.totalorder %v656_v17, 256 }
 0x48e   : > { %v1566_v15 = vsel %vm1565_vm10, %v1564_v40, %v1562_v4  ;;  %v1632_v40 = vperm.slane %v1531_v32, %v1579_v37  ;;  %v1587_v4 = vadd.s32 4294967240, %v3321_v23 }
 0x48f   : > { %v1570_v36 = vsel %vm1569_vm11, %v1568_v63, %v1566_v15 }
 0x493   : > { %v1456_v7 = vld [vmem:[#allocation1] sm:$0xff]  ;;  %v1477_v34 = vpop.permute.xlu0 %1476  ;;  %v4180_v19 = vpop.permute.xlu2 %1497 }
 0x494   : > { %1557 = vperm.xlu1 %2683, %v1456_v7   ;;  %1457 = vst [vmem:[#allocation1] ss:$9 sm:$0xff] %v1163_v11  ;;  %v1572_v29 = vperm.slane %v1477_v34, %v4172_v31  ;;  %v1540_v11 = vpop.permute.xlu1 %1539 }
 0x495   : > { %1458 = vst [vmem:[#allocation1 + $0x1] ss:$9 sm:$0xff] %v1164_v0 }
 0x496   : > { %1459 = vst [vmem:[#allocation1 + $0x2] ss:$9 sm:$0xff] %v1165_v1  ;;  %v1574_v26 = vsel %vm1573_vm7, %v1572_v29, %v1570_v36  ;;  %v1591_v36 = vadd.s32 4294967232, %v3321_v23 }
 0x497   : > { %1460 = vst [vmem:[#allocation1 + $0x3] ss:$9 sm:$0xff] %v1166_v9  ;;  %v1595_v9 = vadd.s32 4294967224, %v3321_v23 }
 0x498   : > { %1461 = vst [vmem:[#allocation1 + $0x4] ss:$9 sm:$0xff] %v1167_v24  ;;  %v1588_v24 = vperm.slane %v4176_v16, %v1587_v4 }
 0x499   : > { %1462 = vst [vmem:[#allocation1 + $0x5] ss:$9 sm:$0xff] %v1168_v57 }
 0x49a   : > { %1463 = vst [vmem:[#allocation1 + $0x6] ss:$9 sm:$0xff] %v1169_v2 }
 0x49b   : > { %1464 = vst [vmem:[#allocation1 + $0x7] ss:$9 sm:$0xff] %v1170_v60  ;;  %v1483_v42 = vpop.permute.xlu0 %1482  ;;  %v4186_v13 = vpop.permute.xlu2 %1506  ;;  %v1638_v60 = vperm.slane %v1540_v11, %v1591_v36 }
 0x49c   : > { %v1580_v12 = vperm.slane %v1483_v42, %v1579_v37  ;;  %v1596_v42 = vperm.slane %v4182_v25, %v1595_v9  ;;  %v1615_v25 = vadd.s32 4294967184, %v3321_v23  ;;  %v1619_v37 = vadd.s32 4294967176, %v3321_v23 }
 0x4a2   : > { %v1465_v5 = vld [vmem:[#allocation1] sm:$0xff] }
 0x4a3   : > { %1560 = vperm.xlu2 %2684, %v1465_v5   ;;  %v4178_v52 = vpop.permute.xlu0 %1491  ;;  %v1516_v10 = vpop.permute.xlu2 %1515  ;;  %v1599_v5 = vadd.s32 4294967216, %v3321_v23 }
 0x4a4   : > { %v1623_v33 = vperm.slane %v1516_v10, %v3321_v23  ;;  %v1592_v34 = vperm.slane %v4178_v52, %v1591_v36 }
 0x4a5   : > { %v1600_v10 = vperm.slane %v4180_v19, %v1599_v5 }
 0x4ab   : > { %v4184_v38 = vpop.permute.xlu0 %1500  ;;  %v1525_v53 = vpop.permute.xlu2 %1524 }
 0x4ac   : > { %v1628_v50 = vperm.slane %v1525_v53, %v4172_v31 }
 0x4b3   : > { %v4192_v21 = vpop.permute.xlu0 %1509  ;;  %v1534_v6 = vpop.permute.xlu2 %1533 }
 0x4bb   : > { %v1519_v30 = vpop.permute.xlu0 %1518  ;;  %v1543_v51 = vpop.permute.xlu2 %1542 }
 0x4bc   : > { %v1624_v47 = vperm.slane %v1519_v30, %v4157_v49  ;;  %v1583_v49 = vadd.s32 4294967248, %v3321_v23 }
 0x4be   : > { %v1958_v39 = vpop.f32.mrf.mxu2  ;;  %v2071_v54 = vpop.f32.mrf.mxu3  ;;  %v1625_v8 = vsel %vm1565_vm10, %v1624_v47, %v1623_v33  ;;  %v1584_v15 = vperm.slane %v1486_v46, %v1583_v49  ;;  %v1634_v1 = vperm.slane %v1534_v6, %v1583_v49  ;;  %v1603_v46 = vadd.s32 4294967208, %v3321_v23 }
 0x4bf   : > { %v2072_v56 = vadd.f32 %v2071_v54, %v1958_v39  ;;  %v1627_v55 = vsel %vm1569_vm11, %v1626_v27, %v1625_v8  ;;  %v1611_v6 = vadd.s32 4294967192, %v3321_v23  ;;  %v1616_v27 = vperm.slane %v4192_v21, %v1615_v25 }
 0x4c0   : > { %v1629_v35 = vsel %vm1573_vm7, %v1628_v50, %v1627_v55  ;;  %v1604_v16 = vperm.slane %v4184_v38, %v1603_v46  ;;  %vm1621_vm10 = vcmask 1048512   ;;  %vm1655_vm11 = vcmask 1040384  }
 0x4c1   : > { %2109 = vst [vmem:[%s3640_s24 + $0xe8] sm:$0xff] %v2072_v56  ;;  %v2141_v45 = vsub.f32 %v2072_v56, %v2714_v28  ;;  %v1549_v56 = vpop.permute.xlu1 %1548  ;;  %v1612_v55 = vperm.slane %v4186_v13, %v1611_v6 }
 0x4c2   : > { %v1644_v47 = vperm.slane %v1549_v56, %v1603_v46 }
 0x4c3   : > { %v2173_v14 = vmul.f32 %v2141_v45, %v2141_v45  ;;  %v1528_v62 = vpop.permute.xlu0 %1527  ;;  %v1552_v52 = vpop.permute.xlu2 %1551  ;;  %v1640_v45 = vperm.slane %v1543_v51, %v1595_v9 }
 0x4c5   : > { %v4195_v41 = vadd.f32 %v4150_v58, %v2173_v14  ;;  %v1575_v58 = vadd.s32 4294967264, %v3321_v23  ;;  %v1607_v14 = vadd.s32 4294967200, %v3321_v23 }
 0x4c7   : > { %v1630_v44 = vperm.slane %v1528_v62, %v1575_v58  ;;  %v1576_v18 = vperm.slane %v1480_v43, %v1575_v58  ;;  %v1608_v38 = vperm.slane %v4190_v20, %v1607_v14  ;;  %v1646_v58 = vperm.slane %v1552_v52, %v1607_v14 }
 0x4c9   : > { %v1578_v22 = vsel %vm1577_vm4, %v1576_v18, %v1574_v26  ;;  %v1631_v59 = vsel %vm1577_vm4, %v1630_v44, %v1629_v35 }
 0x4ca   : > { %v1582_v63 = vsel %vm1581_vm8, %v1580_v12, %v1578_v22  ;;  %v1633_v0 = vsel %vm1581_vm8, %v1632_v40, %v1631_v59  ;;  %v1620_v22 = vperm.slane %v4197_v61, %v1619_v37 }
 0x4cb   : > { %v1537_v3 = vpop.permute.xlu0 %1536  ;;  %v1586_v7 = vsel %vm1585_vm12, %v1584_v15, %v1582_v63  ;;  %v1635_v26 = vsel %vm1585_vm12, %v1634_v1, %v1633_v0  ;;  %v2715_v15 = vld [vmem:[%s3087_s30 + $0xf0] sm:$0xff] }
 0x4cc   : > { %v1636_v31 = vperm.slane %v1537_v3, %v1587_v4  ;;  %v1590_v57 = vsel %vm1589_vm0, %v1588_v24, %v1586_v7 }
 0x4cd   : > { %v1594_v43 = vsel %vm1593_vm9, %v1592_v34, %v1590_v57 }
 0x4ce   : > { %v1637_v2 = vsel %vm1589_vm0, %v1636_v31, %v1635_v26  ;;  %v1598_v28 = vsel %vm1597_vm15, %v1596_v42, %v1594_v43 }
 0x4cf   : > { %v1639_v39 = vsel %vm1593_vm9, %v1638_v60, %v1637_v2  ;;  %v1602_v53 = vsel %vm1601_vm1, %v1600_v10, %v1598_v28 }
 0x4d0   : > { %v1641_v30 = vsel %vm1597_vm15, %v1640_v45, %v1639_v39  ;;  %v1606_v33 = vsel %vm1605_vm2, %v1604_v16, %v1602_v53 }
 0x4d1   : > { %v1610_v19 = vsel %vm1609_vm14, %v1608_v38, %v1606_v33 }
 0x4d2   : > { %v1614_v50 = vsel %vm1613_vm5, %v1612_v55, %v1610_v19 }
 0x4d3   : > { %v1546_v29 = vpop.permute.xlu0 %1545  ;;  %v1618_v18 = vsel %vm1617_vm3, %v1616_v27, %v1614_v50 }
 0x4d4   : > { %v1642_v54 = vperm.slane %v1546_v29, %v1599_v5  ;;  %v1622_v4 = vsel %vm1621_vm10, %v1620_v22, %v1618_v18 }
 0x4d6   : > { %v1643_v48 = vsel %vm1601_vm1, %v1642_v54, %v1641_v30 }
 0x4d7   : > { %v1645_v32 = vsel %vm1605_vm2, %v1644_v47, %v1643_v48 }
 0x4d8   : > { %v1647_v20 = vsel %vm1609_vm14, %v1646_v58, %v1645_v32 }
 0x4db   : > { %v1555_v62 = vpop.permute.xlu0 %1554 }
 0x4dc   : > { %v1648_v8 = vperm.slane %v1555_v62, %v1611_v6 }
 0x4de   : > { %v1649_v49 = vsel %vm1613_vm5, %v1648_v8, %v1647_v20 }
 0x4fd   : > { %v1561_v3 = vpop.permute.xlu2 %1560 }
 0x4fe   : > { %v1652_v21 = vperm.slane %v1561_v3, %v1619_v37 }
 0x506   : > { %v1558_v44 = vpop.permute.xlu1 %1557 }
 0x507   : > { %v1650_v12 = vperm.slane %v1558_v44, %v1615_v25 }
 0x508   : > { %v1961_v35 = vpop.f32.mrf.mxu2  ;;  %v2074_v13 = vpop.f32.mrf.mxu3 }
 0x509   : > { %v1651_v23 = vsel %vm1617_vm3, %v1650_v12, %v1649_v49  ;;  %v2075_v59 = vadd.f32 %v2074_v13, %v1961_v35 }
 0x50a   : > { %v1653_v51 = vsel %vm1621_vm10, %v1652_v21, %v1651_v23 }
 0x50b   : > { %v1654_v40 = vrot.slane %v1653_v51, 7  ;;  %2110 = vst [vmem:[%s3640_s24 + $0xf0] sm:$0xff] %v2075_v59  ;;  %v2142_v36 = vsub.f32 %v2075_v59, %v2715_v15 }
 0x50d   : > { %v1656_v63 = vsel %vm1655_vm11, %v1622_v4, %v1654_v40 }
 0x50e   : > { %1661 = vst.msk [vmem:[%s286_s6] sm:$0x3] %vm1659_vm13, %v1656_v63 }
 0x50f   : > { %2834 = shalt.err (!%p2831_p10)
}
 0x510   : > { %2578 = dma.vmem_to_hbm [thread:$0]  (%p3048_p3), %s2254_s7, 32, %s2256_s8, %s4245_s12   ;;  %v1964_v17 = vpop.f32.mrf.mxu2  ;;  %v2077_v61 = vpop.f32.mrf.mxu3  ;;  %v2174_v11 = vmul.f32 %v2142_v36, %v2142_v36  ;;  %v2716_v31 = vld [vmem:[%s3087_s30 + $0xf8] sm:$0xff] }
 0x511   : > { %v2078_v0 = vadd.f32 %v2077_v61, %v1964_v17  ;;  %s2215_s0 = scalar_lea.sflag [#allocation4], %s3081_s9  ;;  %s2849_s1 = sshra.s32 %s2239_s11, 4  ;;  %s2850_s1 = int_to_ptr.hbm [resolvable:$true] %s2849_s1 }
 0x512   : > { %s2851_s15 = scalar_lea.hbm %s2850_s1, 256  ;;  %s2855_s7 = scalar_lea.hbm %s4311_s3, 512 }
 0x513   : > { %2111 = vst [vmem:[%s3640_s24 + $0xf8] sm:$0xff] %v2078_v0  ;;  %v2143_v7 = vsub.f32 %v2078_v0, %v2716_v31  ;;  %p2852_p12 = scmp.ne.s32.totalorder %s2850_s1, %s2851_s15  ;;  %p2856_p5 = scmp.lt.s32.totalorder %s2850_s1, %s4311_s3 }
 0x514   : > { %p2857_p7 = scmp.lt.s32.totalorder %s2855_s7, %s2851_s15 }
 0x515   : > { %p2853_p13 = pnand %p2852_p12, %p3048_p3 }
 0x516   : > { %p2858_p1 = por %p2857_p7, %p2856_p5 }
 0x517   : > { %p2854_p0 = pneg %p2853_p13 }
 0x519   : > { %p2859_p4 = pnand %p2858_p1, %p2854_p0 }
 0x51b   : > { %2862 = shalt.err (!%p2859_p4)
}
 0x51c   : > { %s2945_s30 = smov 128   ;;  %s2946_s24 = smov 8   ;;  %v2205_v34 = vadd.f32 %v4195_v41, %v2174_v11  ;;  %v2175_v1 = vmul.f32 %v2143_v7, %v2143_v7 }
 0x51d   : > { %2577 = dma.vmem_to_hbm [thread:$0]  (%p3048_p3), %s2237_s29, 4096, %s2239_s11, %s2215_s0, %s2945_s30, %s2945_s30, %s2946_s24  }
 0x51e   : > { %v2206_v29 = vadd.f32 %v2205_v34, %v2175_v1  ;;  %s2264_s27 = scalar_lea.hbm %s4313_s5, %s2998_s22  ;;  %s292_s23 = scalar_lea.vmem [#allocation11], %s3081_s9 }
 0x51f   : > { %s2266_s1 = sshll.u32 %s292_s23, 4  ;;  %s2268_s15 = sshll.u32 %s2264_s27, 4  ;;  %s2267_s1 = int_to_ptr.vmem [resolvable:$true] %s2266_s1  ;;  %s2269_s15 = int_to_ptr.hbm [resolvable:$true] %s2268_s15 }
 0x520   : > { %v2207_v9 = vrot.slane %v2206_v29, 4  ;;  %s2877_s29 = sshra.s32 %s2269_s15, 4  ;;  %s2883_s22 = scalar_lea.hbm %s4313_s5, 2  ;;  %s2878_s29 = int_to_ptr.hbm [resolvable:$true] %s2877_s29 }
 0x521   : > { %s2879_s11 = scalar_lea.hbm %s2878_s29, 1  ;;  %p2884_p9 = scmp.lt.s32.totalorder %s2878_s29, %s4313_s5 }
 0x522   : > { %v2208_v24 = vadd.f32 %v2207_v9, %v2206_v29  ;;  %p2880_p8 = scmp.ne.s32.totalorder %s2878_s29, %s2879_s11  ;;  %p2885_p10 = scmp.lt.s32.totalorder %s2883_s22, %s2879_s11 }
 0x524   : > { %v2209_v26 = vrot.slane %v2208_v24, 2  ;;  %p2881_p11 = pnand %p2880_p8, %p3048_p3  ;;  %p2886_p12 = por %p2885_p10, %p2884_p9 }
 0x526   : > { %v2210_v57 = vadd.f32 %v2209_v26, %v2208_v24  ;;  %p2882_p2 = pneg %p2881_p11 }
 0x528   : > { %v2211_v2 = vrot.slane %v2210_v57, 1  ;;  %p2887_p13 = pnand %p2886_p12, %p2882_p2 }
 0x52a   : > { %v2212_v60 = vadd.f32 %v2211_v2, %v2210_v57 }
 0x52c   : > { %2213 = vst [vmem:[%s292_s23] sm:$0x1] %v2212_v60 }
 0x52d   : > { %2890 = shalt.err (!%p2887_p13)
}
 0x52e   : > { %2579 = dma.vmem_to_hbm [thread:$0]  (%p3048_p3), %s2267_s1, 16, %s2269_s15, %s4245_s12  }
 0x52f PF: > { %s2280_s7 = sand.u32 1, %s2925_s18   ;;  %p4330_p0 = scmp.ge.s32.totalorder %s2937_s21, 2 }
 0x530   : > { %s2281_s8 = scalar_lea.sflag [#allocation4], %s2280_s7 }
 0x531   : > { %p2595_p5 = pnand %p4330_p0, %p3014_p6 }
 0x533   : > { %p2596_p7 = pneg %p2595_p5 }
 0x535   : > { %2916 = dma.done.wait (%p2596_p7), %s2281_s8, 4096  }
 0x536   : > { %2918 = vsyncadd (%p2596_p7), %s2281_s8, 4294963200  ;;  %s4331_s13 = sadd.s32 4294967294, %s2937_s21  }
 0x537   : > { %s2290_s30 = sand.u32 1, %s4331_s13  }
 0x538   : > { %s2291_s24 = scalar_lea.sflag [#allocation10], %s2290_s30 }
 0x539   : > { %2920 = dma.done.wait (%p2596_p7), %s2291_s24, 48  }
 0x53a   : > { %2922 = vsyncadd (%p2596_p7), %s2291_s24, 4294967248  ;;  %p23_p3 = scmp.ge.s32.totalorder %s3038_s14, 4   ;;  %s4332_s18 = smov %s2929_s19 }
 0x53b   : > { %s4333_s19 = smov %s2933_s20  ;;  %s4334_s20 = smov %s3054_s26 }
 0x53c   : > { %s4335_s21 = smov %s3038_s14  ;;  %25 = sbr.rel (!%p23_p3) target bundleno = 11 (0xb), region = 124 }
 0x541   :  { %2306 = vsyncpa [#allocation3], 1 }
 0x542   :  { %2308 = vsyncpa [#allocation3 + $0x1], 1 }
 0x543   :  { %2309 = vsyncpa [#allocation6], 1 }
 0x544   :  { %2310 = vsyncpa [#allocation4], 1 }
 0x545   :  { %2312 = vsyncpa [#allocation4 + $0x1], 1 }
 0x546   :  { %2313 = vsyncpa [#allocation10], 1 }
 0x547   :  { %2315 = vsyncpa [#allocation10 + $0x1], 1 }

</bundles_post_ra>
